<compile_context>
chip_gen: v5e
topology: v5e:2x2
jax: 0.10.0
libtpu: 0.0.40
codegen_flags: <defaults>
</compile_context>

<pallas_src>
import functools

import jax
import jax.numpy as jnp
from jax.experimental import pallas as pl
from jax.experimental.pallas import tpu as pltpu

INPUT_SIZE = 16
HIDDEN = 100          # real LSTM hidden size (PyTorch module)
HIDDEN_PAD = 128      # padded to one full lane tile
NUM_CLASSES = 8
CLASSES_PAD = 128     # padded class dim for a lane-dense logits store

# Kernel gate layout: [i | f | o | g]  (PyTorch row order is [i, f, g, o]).
# Sigmoid gates are contiguous -> one sigmoid over (B, 3*HP), one tanh over (B, HP).
_TORCH_GATE_FOR_SLOT = (0, 1, 3, 2)


# --------------------------- Fused LSTM + FC kernel ---------------------------
def lstm_emg_kernel(x_ref, wih_ref, whh_ref, b_ref, wfc_ref, bfc_ref,
                    logits_ref, feat_ref, gx_ref, *, T, B):
    # x_ref   : (T*B, I)    time-major flattened input (row = t*B + b), f32
    # wih_ref : (I,  4*HP)  bf16, gate-blocked [i|f|o|g], 128-padded per gate
    # whh_ref : (HP, 4*HP)  bf16, rows 100:128 zero
    # b_ref   : (1,  4*HP)  f32, b_ih + b_hh, gate-blocked / padded
    # wfc_ref : (HP, CP)    bf16, rows 100:128 and cols C:CP zero
    # bfc_ref : (1,  CP)    f32
    # logits_ref: (B, CP)   padded logits (slice [:, :C] outside)
    # feat_ref  : (B, HP)   padded final hidden state (slice [:, :H] outside)
    # gx_ref  : (T*B, 4*HP) f32 VMEM scratch for the hoisted input projection
    HP = whh_ref.shape[0]

    # Hoisted input projection for every timestep: one bf16 MXU call, parked in VMEM
    # scratch so it never lives in vregs across the recurrence.
    gx_ref[...] = (
        jnp.dot(x_ref[...].astype(jnp.bfloat16), wih_ref[...],
                preferred_element_type=jnp.float32)
        + b_ref[...]
    )                                                        # (T*B, 4*HP) f32

    h = jnp.zeros((B, HP), jnp.float32)
    c = jnp.zeros((B, HP), jnp.float32)

    # Fully unrolled recurrence: per step one bf16 (B,HP)x(HP,4*HP) MXU call plus
    # VPU/EUP gate math.  Gate slices are 128-lane aligned => free views.
    for t in range(T):
        gates = gx_ref[pl.ds(t * B, B), :] + jnp.dot(
            h.astype(jnp.bfloat16), whh_ref[...],
            preferred_element_type=jnp.float32)              # (B, 4*HP) f32
        sig = jax.nn.sigmoid(gates[:, :3 * HP])              # [i | f | o] in one EUP pass
        g_g = jnp.tanh(gates[:, 3 * HP:])
        i_g = sig[:, 0 * HP:1 * HP]
        f_g = sig[:, 1 * HP:2 * HP]
        o_g = sig[:, 2 * HP:3 * HP]
        c = f_g * c + i_g * g_g
        h = o_g * jnp.tanh(c)
        # Padded lanes: gate preactivations are exactly 0 there (zero bf16 weight
        # cols / rows and zero bias), so c_pad = 0.5*c_pad stays 0 and h_pad stays 0.

    feat_ref[...] = h                                        # dropout (eval) = identity
    logits_ref[...] = (
        jnp.dot(h.astype(jnp.bfloat16), wfc_ref[...],
                preferred_element_type=jnp.float32)
        + bfc_ref[...]
    )


def lstm_emg_fused(x_tm_flat, wih, whh, b, wfc, bfc, *, T, B):
    I = x_tm_flat.shape[1]
    HP = whh.shape[0]
    CP = wfc.shape[1]
    kernel = functools.partial(lstm_emg_kernel, T=T, B=B)
    return pl.pallas_call(
        kernel,
        out_shape=(
            jax.ShapeDtypeStruct((B, CP), jnp.float32),   # padded logits
            jax.ShapeDtypeStruct((B, HP), jnp.float32),   # padded feat
        ),
        in_specs=[
            pl.BlockSpec((T * B, I), lambda: (0, 0)),
            pl.BlockSpec((I, 4 * HP), lambda: (0, 0)),
            pl.BlockSpec((HP, 4 * HP), lambda: (0, 0)),
            pl.BlockSpec((1, 4 * HP), lambda: (0, 0)),
            pl.BlockSpec((HP, CP), lambda: (0, 0)),
            pl.BlockSpec((1, CP), lambda: (0, 0)),
        ],
        out_specs=(
            pl.BlockSpec((B, CP), lambda: (0, 0)),
            pl.BlockSpec((B, HP), lambda: (0, 0)),
        ),
        scratch_shapes=[pltpu.VMEM((T * B, 4 * HP), jnp.float32)],
        grid=(),
    )(x_tm_flat, wih, whh, b, wfc, bfc)


# ------------------------------ Module wrapper --------------------------------
@jax.jit
def lstm_emg_forward(x, kparams):
    """x: [B, T, 16] (batch_first, as in PyTorch). Returns (logits, feat)."""
    B, T, I = x.shape
    x = x.astype(jnp.float32)
    # time-major flatten: row index = t*B + b (single tiny XLA transpose on x only)
    x_tm_flat = jnp.transpose(x, (1, 0, 2)).reshape(T * B, I)
    logits_p, feat_p = lstm_emg_fused(
        x_tm_flat,
        kparams["w_ih_t"], kparams["w_hh_t"], kparams["b_lstm"],
        kparams["w_fc_t"], kparams["b_fc"],
        T=T, B=B,
    )
    feat = feat_p[:, :HIDDEN]
    logits = logits_p[:, :NUM_CLASSES]
    return logits, feat


# ------------------------------- Parameters -----------------------------------
def init_params(key):
    """Raw PyTorch-layout parameters (f32)."""
    kih, khh, kbih, kbhh, kfw, kfb = jax.random.split(key, 6)
    H, I, C = HIDDEN, INPUT_SIZE, NUM_CLASSES
    s = 1.0 / jnp.sqrt(H)
    return {
        "w_ih": jax.random.uniform(kih, (4 * H, I), jnp.float32, -s, s),
        "w_hh": jax.random.uniform(khh, (4 * H, H), jnp.float32, -s, s),
        "b_ih": jax.random.uniform(kbih, (4 * H,), jnp.float32, -s, s),
        "b_hh": jax.random.uniform(kbhh, (4 * H,), jnp.float32, -s, s),
        "w_fc": jax.random.uniform(kfw, (C, H), jnp.float32, -s, s),
        "b_fc": jax.random.uniform(kfb, (C,), jnp.float32, -s, s),
    }


def pad_params(p):
    """Re-lay weights into 128-padded, gate-blocked [i|f|o|g] kernel layout.

    Weight matrices are stored in bf16 (MXU-native); biases stay f32 (added to the
    f32 accumulator).  Padding lanes are exact zeros both before and after the bf16
    cast, so padded h/c lanes never leak into real lanes.
    """
    H, HP, C, CP = HIDDEN, HIDDEN_PAD, NUM_CLASSES, CLASSES_PAD

    def gate_pad_cols(w_t):  # (rows, 4H) torch-order -> (rows, 4HP) kernel-order
        rows = w_t.shape[0]
        out = jnp.zeros((rows, 4 * HP), jnp.float32)
        for slot, g in enumerate(_TORCH_GATE_FOR_SLOT):
            out = out.at[:, slot * HP:slot * HP + H].set(w_t[:, g * H:(g + 1) * H])
        return out

    w_ih_t = gate_pad_cols(p["w_ih"].T)                                   # (I, 4HP)
    w_hh_t = jnp.zeros((HP, 4 * HP), jnp.float32)
    w_hh_t = w_hh_t.at[:H, :].set(gate_pad_cols(p["w_hh"].T))             # (HP, 4HP)
    b_lstm = gate_pad_cols((p["b_ih"] + p["b_hh"])[None, :])              # (1, 4HP)
    w_fc_t = jnp.zeros((HP, CP), jnp.float32).at[:H, :C].set(p["w_fc"].T) # (HP, CP)
    b_fc = jnp.zeros((1, CP), jnp.float32).at[0, :C].set(p["b_fc"])       # (1, CP)
    return {
        "w_ih_t": w_ih_t.astype(jnp.bfloat16),
        "w_hh_t": w_hh_t.astype(jnp.bfloat16),
        "b_lstm": b_lstm,
        "w_fc_t": w_fc_t.astype(jnp.bfloat16),
        "b_fc": b_fc,
    }


# ------------------------ Pure-JAX references (check) --------------------------
def _reference_forward(x, p, cast_dtype):
    """Scan reference.  cast_dtype=f32 -> exact module math; bf16 -> emulates the
    kernel's bf16-input / f32-accumulate MXU arithmetic."""
    H = HIDDEN
    x = x.astype(jnp.float32)
    B, T, _ = x.shape
    w_ih_t = p["w_ih"].T.astype(cast_dtype)
    w_hh_t = p["w_hh"].T.astype(cast_dtype)
    w_fc_t = p["w_fc"].T.astype(cast_dtype)
    b = (p["b_ih"] + p["b_hh"])[None, :]

    def step(carry, x_t):
        h, c = carry
        gates = (
            jnp.dot(x_t.astype(cast_dtype), w_ih_t, preferred_element_type=jnp.float32)
            + jnp.dot(h.astype(cast_dtype), w_hh_t, preferred_element_type=jnp.float32)
            + b
        )
        i = jax.nn.sigmoid(gates[:, 0 * H:1 * H])
        f = jax.nn.sigmoid(gates[:, 1 * H:2 * H])
        g = jnp.tanh(gates[:, 2 * H:3 * H])
        o = jax.nn.sigmoid(gates[:, 3 * H:4 * H])
        c = f * c + i * g
        h = o * jnp.tanh(c)
        return (h, c), None

    h0 = jnp.zeros((B, H), jnp.float32)
    c0 = jnp.zeros((B, H), jnp.float32)
    (h, _), _ = jax.lax.scan(step, (h0, c0), jnp.transpose(x, (1, 0, 2)))
    feat = h                                   # == out[:, -1, :]
    logits = (
        jnp.dot(feat.astype(cast_dtype), w_fc_t, preferred_element_type=jnp.float32)
        + p["b_fc"][None, :]
    )
    return logits, feat


if __name__ == "__main__":
    key = jax.random.PRNGKey(0)
    kx, kp = jax.random.split(key)
    B, T = 8, 8
    x = jax.random.normal(kx, (B, T, INPUT_SIZE), jnp.float32)

    raw_params = init_params(kp)
    kparams = pad_params(raw_params)

    logits, feat = lstm_emg_forward(x, kparams)
    logits = jax.block_until_ready(logits)
    feat = jax.block_until_ready(feat)

    assert logits.shape == (B, NUM_CLASSES) and feat.shape == (B, HIDDEN)

    # Tight check vs a reference that uses the same bf16-input / f32-accumulate math.
    ref_logits_bf, ref_feat_bf = _reference_forward(x, raw_params, jnp.bfloat16)
    assert jnp.allclose(logits, ref_logits_bf, atol=1e-3, rtol=1e-3)
    assert jnp.allclose(feat, ref_feat_bf, atol=1e-3, rtol=1e-3)

    # Looser check vs the exact f32 module math (bf16 MXU inputs cost ~1e-3 abs).
    ref_logits_f32, ref_feat_f32 = _reference_forward(x, raw_params, jnp.float32)
    assert jnp.allclose(logits, ref_logits_f32, atol=3e-2, rtol=3e-2)
    assert jnp.allclose(feat, ref_feat_f32, atol=3e-2, rtol=3e-2)

    print("KERNEL_OK")
</pallas_src>

<mosaic_0001>
module attributes {stable_mosaic.version = 11 : i64} {
  func.func @lstm_emg_kernel(%arg0: memref<64x16xf32, #tpu.memory_space<vmem>>, %arg1: memref<16x512xbf16, #tpu.memory_space<vmem>>, %arg2: memref<128x512xbf16, #tpu.memory_space<vmem>>, %arg3: memref<1x512xf32, #tpu.memory_space<vmem>>, %arg4: memref<128x128xbf16, #tpu.memory_space<vmem>>, %arg5: memref<1x128xf32, #tpu.memory_space<vmem>>, %arg6: memref<8x128xf32, #tpu.memory_space<vmem>>, %arg7: memref<8x128xf32, #tpu.memory_space<vmem>>, %arg8: memref<64x512xf32, #tpu.memory_space<vmem>>) attributes {dimension_semantics = [], scalar_prefetch = 0 : i64, scratch_operands = 1 : i64, tpu.core_type = #tpu.core_type<tc>} {
    %c0 = arith.constant 0 : index
    %c0_0 = arith.constant 0 : index
    %0 = vector.load %arg0[%c0, %c0_0] : memref<64x16xf32, #tpu.memory_space<vmem>>, vector<64x16xf32>
    %1 = arith.truncf %0 : vector<64x16xf32> to vector<64x16xbf16>
    %c0_1 = arith.constant 0 : index
    %c0_2 = arith.constant 0 : index
    %2 = vector.load %arg1[%c0_1, %c0_2] : memref<16x512xbf16, #tpu.memory_space<vmem>>, vector<16x512xbf16>
    %cst = arith.constant dense<0.000000e+00> : vector<64x512xf32>
    %3 = tpu.matmul %1, %2, %cst {dimension_numbers = #tpu.dot_dimension_numbers<[1], [0], [0], [1], [0, 0, 1, 1], [], []>} : vector<64x16xbf16>, vector<16x512xbf16>, vector<64x512xf32> -> vector<64x512xf32>
    %c0_3 = arith.constant 0 : index
    %c0_4 = arith.constant 0 : index
    %4 = vector.load %arg3[%c0_3, %c0_4] : memref<1x512xf32, #tpu.memory_space<vmem>>, vector<1x512xf32>
    %5 = vector.broadcast %4 : vector<1x512xf32> to vector<64x512xf32>
    %6 = arith.addf %3, %5 : vector<64x512xf32>
    %c0_5 = arith.constant 0 : index
    %c0_6 = arith.constant 0 : index
    %7 = vector.load %arg8[%c0_5, %c0_6] : memref<64x512xf32, #tpu.memory_space<vmem>>, vector<64x512xf32>
    tpu.vector_store %arg8[%c0_5, %c0_6], %6 {strides = array<i32>} : memref<64x512xf32, #tpu.memory_space<vmem>>, vector<64x512xf32>,
    %cst_7 = arith.constant 0.000000e+00 : f32
    %8 = vector.broadcast %cst_7 : f32 to vector<8x128xf32>
    %cst_8 = arith.constant 0.000000e+00 : f32
    %9 = vector.broadcast %cst_8 : f32 to vector<8x128xf32>
    %c0_9 = arith.constant 0 : index
    %c0_10 = arith.constant 0 : index
    %10 = vector.load %arg8[%c0_9, %c0_10] : memref<64x512xf32, #tpu.memory_space<vmem>>, vector<8x512xf32>
    %11 = arith.truncf %8 : vector<8x128xf32> to vector<8x128xbf16>
    %c0_11 = arith.constant 0 : index
    %c0_12 = arith.constant 0 : index
    %12 = vector.load %arg2[%c0_11, %c0_12] : memref<128x512xbf16, #tpu.memory_space<vmem>>, vector<128x512xbf16>
    %cst_13 = arith.constant dense<0.000000e+00> : vector<8x512xf32>
    %13 = tpu.matmul %11, %12, %cst_13 {dimension_numbers = #tpu.dot_dimension_numbers<[1], [0], [0], [1], [0, 0, 1, 1], [], []>} : vector<8x128xbf16>, vector<128x512xbf16>, vector<8x512xf32> -> vector<8x512xf32>
    %14 = arith.addf %10, %13 : vector<8x512xf32>
    %15 = vector.extract_strided_slice %14 {offsets = [0, 0], sizes = [8, 384], strides = [1, 1]} : vector<8x512xf32> to vector<8x384xf32>
    %16 = arith.negf %15 : vector<8x384xf32>
    %17 = math.exp %16 : vector<8x384xf32>
    %cst_14 = arith.constant 1.000000e+00 : f32
    %18 = vector.broadcast %cst_14 : f32 to vector<8x384xf32>
    %19 = arith.addf %18, %17 : vector<8x384xf32>
    %20 = arith.divf %18, %19 : vector<8x384xf32>
    %21 = vector.extract_strided_slice %14 {offsets = [0, 384], sizes = [8, 128], strides = [1, 1]} : vector<8x512xf32> to vector<8x128xf32>
    %22 = math.tanh %21 : vector<8x128xf32>
    %23 = vector.extract_strided_slice %20 {offsets = [0, 0], sizes = [8, 128], strides = [1, 1]} : vector<8x384xf32> to vector<8x128xf32>
    %24 = vector.extract_strided_slice %20 {offsets = [0, 128], sizes = [8, 128], strides = [1, 1]} : vector<8x384xf32> to vector<8x128xf32>
    %25 = vector.extract_strided_slice %20 {offsets = [0, 256], sizes = [8, 128], strides = [1, 1]} : vector<8x384xf32> to vector<8x128xf32>
    %26 = arith.mulf %24, %9 : vector<8x128xf32>
    %27 = arith.mulf %23, %22 : vector<8x128xf32>
    %28 = arith.addf %26, %27 : vector<8x128xf32>
    %29 = math.tanh %28 : vector<8x128xf32>
    %30 = arith.mulf %25, %29 : vector<8x128xf32>
    %c8 = arith.constant 8 : index
    %c0_15 = arith.constant 0 : index
    %31 = vector.load %arg8[%c8, %c0_15] : memref<64x512xf32, #tpu.memory_space<vmem>>, vector<8x512xf32>
    %32 = arith.truncf %30 : vector<8x128xf32> to vector<8x128xbf16>
    %c0_16 = arith.constant 0 : index
    %c0_17 = arith.constant 0 : index
    %33 = vector.load %arg2[%c0_16, %c0_17] : memref<128x512xbf16, #tpu.memory_space<vmem>>, vector<128x512xbf16>
    %cst_18 = arith.constant dense<0.000000e+00> : vector<8x512xf32>
    %34 = tpu.matmul %32, %33, %cst_18 {dimension_numbers = #tpu.dot_dimension_numbers<[1], [0], [0], [1], [0, 0, 1, 1], [], []>} : vector<8x128xbf16>, vector<128x512xbf16>, vector<8x512xf32> -> vector<8x512xf32>
    %35 = arith.addf %31, %34 : vector<8x512xf32>
    %36 = vector.extract_strided_slice %35 {offsets = [0, 0], sizes = [8, 384], strides = [1, 1]} : vector<8x512xf32> to vector<8x384xf32>
    %37 = arith.negf %36 : vector<8x384xf32>
    %38 = math.exp %37 : vector<8x384xf32>
    %cst_19 = arith.constant 1.000000e+00 : f32
    %39 = vector.broadcast %cst_19 : f32 to vector<8x384xf32>
    %40 = arith.addf %39, %38 : vector<8x384xf32>
    %41 = arith.divf %39, %40 : vector<8x384xf32>
    %42 = vector.extract_strided_slice %35 {offsets = [0, 384], sizes = [8, 128], strides = [1, 1]} : vector<8x512xf32> to vector<8x128xf32>
    %43 = math.tanh %42 : vector<8x128xf32>
    %44 = vector.extract_strided_slice %41 {offsets = [0, 0], sizes = [8, 128], strides = [1, 1]} : vector<8x384xf32> to vector<8x128xf32>
    %45 = vector.extract_strided_slice %41 {offsets = [0, 128], sizes = [8, 128], strides = [1, 1]} : vector<8x384xf32> to vector<8x128xf32>
    %46 = vector.extract_strided_slice %41 {offsets = [0, 256], sizes = [8, 128], strides = [1, 1]} : vector<8x384xf32> to vector<8x128xf32>
    %47 = arith.mulf %45, %28 : vector<8x128xf32>
    %48 = arith.mulf %44, %43 : vector<8x128xf32>
    %49 = arith.addf %47, %48 : vector<8x128xf32>
    %50 = math.tanh %49 : vector<8x128xf32>
    %51 = arith.mulf %46, %50 : vector<8x128xf32>
    %c16 = arith.constant 16 : index
    %c0_20 = arith.constant 0 : index
    %52 = vector.load %arg8[%c16, %c0_20] : memref<64x512xf32, #tpu.memory_space<vmem>>, vector<8x512xf32>
    %53 = arith.truncf %51 : vector<8x128xf32> to vector<8x128xbf16>
    %c0_21 = arith.constant 0 : index
    %c0_22 = arith.constant 0 : index
    %54 = vector.load %arg2[%c0_21, %c0_22] : memref<128x512xbf16, #tpu.memory_space<vmem>>, vector<128x512xbf16>
    %cst_23 = arith.constant dense<0.000000e+00> : vector<8x512xf32>
    %55 = tpu.matmul %53, %54, %cst_23 {dimension_numbers = #tpu.dot_dimension_numbers<[1], [0], [0], [1], [0, 0, 1, 1], [], []>} : vector<8x128xbf16>, vector<128x512xbf16>, vector<8x512xf32> -> vector<8x512xf32>
    %56 = arith.addf %52, %55 : vector<8x512xf32>
    %57 = vector.extract_strided_slice %56 {offsets = [0, 0], sizes = [8, 384], strides = [1, 1]} : vector<8x512xf32> to vector<8x384xf32>
    %58 = arith.negf %57 : vector<8x384xf32>
    %59 = math.exp %58 : vector<8x384xf32>
    %cst_24 = arith.constant 1.000000e+00 : f32
    %60 = vector.broadcast %cst_24 : f32 to vector<8x384xf32>
    %61 = arith.addf %60, %59 : vector<8x384xf32>
    %62 = arith.divf %60, %61 : vector<8x384xf32>
    %63 = vector.extract_strided_slice %56 {offsets = [0, 384], sizes = [8, 128], strides = [1, 1]} : vector<8x512xf32> to vector<8x128xf32>
    %64 = math.tanh %63 : vector<8x128xf32>
    %65 = vector.extract_strided_slice %62 {offsets = [0, 0], sizes = [8, 128], strides = [1, 1]} : vector<8x384xf32> to vector<8x128xf32>
    %66 = vector.extract_strided_slice %62 {offsets = [0, 128], sizes = [8, 128], strides = [1, 1]} : vector<8x384xf32> to vector<8x128xf32>
    %67 = vector.extract_strided_slice %62 {offsets = [0, 256], sizes = [8, 128], strides = [1, 1]} : vector<8x384xf32> to vector<8x128xf32>
    %68 = arith.mulf %66, %49 : vector<8x128xf32>
    %69 = arith.mulf %65, %64 : vector<8x128xf32>
    %70 = arith.addf %68, %69 : vector<8x128xf32>
    %71 = math.tanh %70 : vector<8x128xf32>
    %72 = arith.mulf %67, %71 : vector<8x128xf32>
    %c24 = arith.constant 24 : index
    %c0_25 = arith.constant 0 : index
    %73 = vector.load %arg8[%c24, %c0_25] : memref<64x512xf32, #tpu.memory_space<vmem>>, vector<8x512xf32>
    %74 = arith.truncf %72 : vector<8x128xf32> to vector<8x128xbf16>
    %c0_26 = arith.constant 0 : index
    %c0_27 = arith.constant 0 : index
    %75 = vector.load %arg2[%c0_26, %c0_27] : memref<128x512xbf16, #tpu.memory_space<vmem>>, vector<128x512xbf16>
    %cst_28 = arith.constant dense<0.000000e+00> : vector<8x512xf32>
    %76 = tpu.matmul %74, %75, %cst_28 {dimension_numbers = #tpu.dot_dimension_numbers<[1], [0], [0], [1], [0, 0, 1, 1], [], []>} : vector<8x128xbf16>, vector<128x512xbf16>, vector<8x512xf32> -> vector<8x512xf32>
    %77 = arith.addf %73, %76 : vector<8x512xf32>
    %78 = vector.extract_strided_slice %77 {offsets = [0, 0], sizes = [8, 384], strides = [1, 1]} : vector<8x512xf32> to vector<8x384xf32>
    %79 = arith.negf %78 : vector<8x384xf32>
    %80 = math.exp %79 : vector<8x384xf32>
    %cst_29 = arith.constant 1.000000e+00 : f32
    %81 = vector.broadcast %cst_29 : f32 to vector<8x384xf32>
    %82 = arith.addf %81, %80 : vector<8x384xf32>
    %83 = arith.divf %81, %82 : vector<8x384xf32>
    %84 = vector.extract_strided_slice %77 {offsets = [0, 384], sizes = [8, 128], strides = [1, 1]} : vector<8x512xf32> to vector<8x128xf32>
    %85 = math.tanh %84 : vector<8x128xf32>
    %86 = vector.extract_strided_slice %83 {offsets = [0, 0], sizes = [8, 128], strides = [1, 1]} : vector<8x384xf32> to vector<8x128xf32>
    %87 = vector.extract_strided_slice %83 {offsets = [0, 128], sizes = [8, 128], strides = [1, 1]} : vector<8x384xf32> to vector<8x128xf32>
    %88 = vector.extract_strided_slice %83 {offsets = [0, 256], sizes = [8, 128], strides = [1, 1]} : vector<8x384xf32> to vector<8x128xf32>
    %89 = arith.mulf %87, %70 : vector<8x128xf32>
    %90 = arith.mulf %86, %85 : vector<8x128xf32>
    %91 = arith.addf %89, %90 : vector<8x128xf32>
    %92 = math.tanh %91 : vector<8x128xf32>
    %93 = arith.mulf %88, %92 : vector<8x128xf32>
    %c32 = arith.constant 32 : index
    %c0_30 = arith.constant 0 : index
    %94 = vector.load %arg8[%c32, %c0_30] : memref<64x512xf32, #tpu.memory_space<vmem>>, vector<8x512xf32>
    %95 = arith.truncf %93 : vector<8x128xf32> to vector<8x128xbf16>
    %c0_31 = arith.constant 0 : index
    %c0_32 = arith.constant 0 : index
    %96 = vector.load %arg2[%c0_31, %c0_32] : memref<128x512xbf16, #tpu.memory_space<vmem>>, vector<128x512xbf16>
    %cst_33 = arith.constant dense<0.000000e+00> : vector<8x512xf32>
    %97 = tpu.matmul %95, %96, %cst_33 {dimension_numbers = #tpu.dot_dimension_numbers<[1], [0], [0], [1], [0, 0, 1, 1], [], []>} : vector<8x128xbf16>, vector<128x512xbf16>, vector<8x512xf32> -> vector<8x512xf32>
    %98 = arith.addf %94, %97 : vector<8x512xf32>
    %99 = vector.extract_strided_slice %98 {offsets = [0, 0], sizes = [8, 384], strides = [1, 1]} : vector<8x512xf32> to vector<8x384xf32>
    %100 = arith.negf %99 : vector<8x384xf32>
    %101 = math.exp %100 : vector<8x384xf32>
    %cst_34 = arith.constant 1.000000e+00 : f32
    %102 = vector.broadcast %cst_34 : f32 to vector<8x384xf32>
    %103 = arith.addf %102, %101 : vector<8x384xf32>
    %104 = arith.divf %102, %103 : vector<8x384xf32>
    %105 = vector.extract_strided_slice %98 {offsets = [0, 384], sizes = [8, 128], strides = [1, 1]} : vector<8x512xf32> to vector<8x128xf32>
    %106 = math.tanh %105 : vector<8x128xf32>
    %107 = vector.extract_strided_slice %104 {offsets = [0, 0], sizes = [8, 128], strides = [1, 1]} : vector<8x384xf32> to vector<8x128xf32>
    %108 = vector.extract_strided_slice %104 {offsets = [0, 128], sizes = [8, 128], strides = [1, 1]} : vector<8x384xf32> to vector<8x128xf32>
    %109 = vector.extract_strided_slice %104 {offsets = [0, 256], sizes = [8, 128], strides = [1, 1]} : vector<8x384xf32> to vector<8x128xf32>
    %110 = arith.mulf %108, %91 : vector<8x128xf32>
    %111 = arith.mulf %107, %106 : vector<8x128xf32>
    %112 = arith.addf %110, %111 : vector<8x128xf32>
    %113 = math.tanh %112 : vector<8x128xf32>
    %114 = arith.mulf %109, %113 : vector<8x128xf32>
    %c40 = arith.constant 40 : index
    %c0_35 = arith.constant 0 : index
    %115 = vector.load %arg8[%c40, %c0_35] : memref<64x512xf32, #tpu.memory_space<vmem>>, vector<8x512xf32>
    %116 = arith.truncf %114 : vector<8x128xf32> to vector<8x128xbf16>
    %c0_36 = arith.constant 0 : index
    %c0_37 = arith.constant 0 : index
    %117 = vector.load %arg2[%c0_36, %c0_37] : memref<128x512xbf16, #tpu.memory_space<vmem>>, vector<128x512xbf16>
    %cst_38 = arith.constant dense<0.000000e+00> : vector<8x512xf32>
    %118 = tpu.matmul %116, %117, %cst_38 {dimension_numbers = #tpu.dot_dimension_numbers<[1], [0], [0], [1], [0, 0, 1, 1], [], []>} : vector<8x128xbf16>, vector<128x512xbf16>, vector<8x512xf32> -> vector<8x512xf32>
    %119 = arith.addf %115, %118 : vector<8x512xf32>
    %120 = vector.extract_strided_slice %119 {offsets = [0, 0], sizes = [8, 384], strides = [1, 1]} : vector<8x512xf32> to vector<8x384xf32>
    %121 = arith.negf %120 : vector<8x384xf32>
    %122 = math.exp %121 : vector<8x384xf32>
    %cst_39 = arith.constant 1.000000e+00 : f32
    %123 = vector.broadcast %cst_39 : f32 to vector<8x384xf32>
    %124 = arith.addf %123, %122 : vector<8x384xf32>
    %125 = arith.divf %123, %124 : vector<8x384xf32>
    %126 = vector.extract_strided_slice %119 {offsets = [0, 384], sizes = [8, 128], strides = [1, 1]} : vector<8x512xf32> to vector<8x128xf32>
    %127 = math.tanh %126 : vector<8x128xf32>
    %128 = vector.extract_strided_slice %125 {offsets = [0, 0], sizes = [8, 128], strides = [1, 1]} : vector<8x384xf32> to vector<8x128xf32>
    %129 = vector.extract_strided_slice %125 {offsets = [0, 128], sizes = [8, 128], strides = [1, 1]} : vector<8x384xf32> to vector<8x128xf32>
    %130 = vector.extract_strided_slice %125 {offsets = [0, 256], sizes = [8, 128], strides = [1, 1]} : vector<8x384xf32> to vector<8x128xf32>
    %131 = arith.mulf %129, %112 : vector<8x128xf32>
    %132 = arith.mulf %128, %127 : vector<8x128xf32>
    %133 = arith.addf %131, %132 : vector<8x128xf32>
    %134 = math.tanh %133 : vector<8x128xf32>
    %135 = arith.mulf %130, %134 : vector<8x128xf32>
    %c48 = arith.constant 48 : index
    %c0_40 = arith.constant 0 : index
    %136 = vector.load %arg8[%c48, %c0_40] : memref<64x512xf32, #tpu.memory_space<vmem>>, vector<8x512xf32>
    %137 = arith.truncf %135 : vector<8x128xf32> to vector<8x128xbf16>
    %c0_41 = arith.constant 0 : index
    %c0_42 = arith.constant 0 : index
    %138 = vector.load %arg2[%c0_41, %c0_42] : memref<128x512xbf16, #tpu.memory_space<vmem>>, vector<128x512xbf16>
    %cst_43 = arith.constant dense<0.000000e+00> : vector<8x512xf32>
    %139 = tpu.matmul %137, %138, %cst_43 {dimension_numbers = #tpu.dot_dimension_numbers<[1], [0], [0], [1], [0, 0, 1, 1], [], []>} : vector<8x128xbf16>, vector<128x512xbf16>, vector<8x512xf32> -> vector<8x512xf32>
    %140 = arith.addf %136, %139 : vector<8x512xf32>
    %141 = vector.extract_strided_slice %140 {offsets = [0, 0], sizes = [8, 384], strides = [1, 1]} : vector<8x512xf32> to vector<8x384xf32>
    %142 = arith.negf %141 : vector<8x384xf32>
    %143 = math.exp %142 : vector<8x384xf32>
    %cst_44 = arith.constant 1.000000e+00 : f32
    %144 = vector.broadcast %cst_44 : f32 to vector<8x384xf32>
    %145 = arith.addf %144, %143 : vector<8x384xf32>
    %146 = arith.divf %144, %145 : vector<8x384xf32>
    %147 = vector.extract_strided_slice %140 {offsets = [0, 384], sizes = [8, 128], strides = [1, 1]} : vector<8x512xf32> to vector<8x128xf32>
    %148 = math.tanh %147 : vector<8x128xf32>
    %149 = vector.extract_strided_slice %146 {offsets = [0, 0], sizes = [8, 128], strides = [1, 1]} : vector<8x384xf32> to vector<8x128xf32>
    %150 = vector.extract_strided_slice %146 {offsets = [0, 128], sizes = [8, 128], strides = [1, 1]} : vector<8x384xf32> to vector<8x128xf32>
    %151 = vector.extract_strided_slice %146 {offsets = [0, 256], sizes = [8, 128], strides = [1, 1]} : vector<8x384xf32> to vector<8x128xf32>
    %152 = arith.mulf %150, %133 : vector<8x128xf32>
    %153 = arith.mulf %149, %148 : vector<8x128xf32>
    %154 = arith.addf %152, %153 : vector<8x128xf32>
    %155 = math.tanh %154 : vector<8x128xf32>
    %156 = arith.mulf %151, %155 : vector<8x128xf32>
    %c56 = arith.constant 56 : index
    %c0_45 = arith.constant 0 : index
    %157 = vector.load %arg8[%c56, %c0_45] : memref<64x512xf32, #tpu.memory_space<vmem>>, vector<8x512xf32>
    %158 = arith.truncf %156 : vector<8x128xf32> to vector<8x128xbf16>
    %c0_46 = arith.constant 0 : index
    %c0_47 = arith.constant 0 : index
    %159 = vector.load %arg2[%c0_46, %c0_47] : memref<128x512xbf16, #tpu.memory_space<vmem>>, vector<128x512xbf16>
    %cst_48 = arith.constant dense<0.000000e+00> : vector<8x512xf32>
    %160 = tpu.matmul %158, %159, %cst_48 {dimension_numbers = #tpu.dot_dimension_numbers<[1], [0], [0], [1], [0, 0, 1, 1], [], []>} : vector<8x128xbf16>, vector<128x512xbf16>, vector<8x512xf32> -> vector<8x512xf32>
    %161 = arith.addf %157, %160 : vector<8x512xf32>
    %162 = vector.extract_strided_slice %161 {offsets = [0, 0], sizes = [8, 384], strides = [1, 1]} : vector<8x512xf32> to vector<8x384xf32>
    %163 = arith.negf %162 : vector<8x384xf32>
    %164 = math.exp %163 : vector<8x384xf32>
    %cst_49 = arith.constant 1.000000e+00 : f32
    %165 = vector.broadcast %cst_49 : f32 to vector<8x384xf32>
    %166 = arith.addf %165, %164 : vector<8x384xf32>
    %167 = arith.divf %165, %166 : vector<8x384xf32>
    %168 = vector.extract_strided_slice %161 {offsets = [0, 384], sizes = [8, 128], strides = [1, 1]} : vector<8x512xf32> to vector<8x128xf32>
    %169 = math.tanh %168 : vector<8x128xf32>
    %170 = vector.extract_strided_slice %167 {offsets = [0, 0], sizes = [8, 128], strides = [1, 1]} : vector<8x384xf32> to vector<8x128xf32>
    %171 = vector.extract_strided_slice %167 {offsets = [0, 128], sizes = [8, 128], strides = [1, 1]} : vector<8x384xf32> to vector<8x128xf32>
    %172 = vector.extract_strided_slice %167 {offsets = [0, 256], sizes = [8, 128], strides = [1, 1]} : vector<8x384xf32> to vector<8x128xf32>
    %173 = arith.mulf %171, %154 : vector<8x128xf32>
    %174 = arith.mulf %170, %169 : vector<8x128xf32>
    %175 = arith.addf %173, %174 : vector<8x128xf32>
    %176 = math.tanh %175 : vector<8x128xf32>
    %177 = arith.mulf %172, %176 : vector<8x128xf32>
    %c0_50 = arith.constant 0 : index
    %c0_51 = arith.constant 0 : index
    %178 = vector.load %arg7[%c0_50, %c0_51] : memref<8x128xf32, #tpu.memory_space<vmem>>, vector<8x128xf32>
    tpu.vector_store %arg7[%c0_50, %c0_51], %177 {strides = array<i32>} : memref<8x128xf32, #tpu.memory_space<vmem>>, vector<8x128xf32>,
    %179 = arith.truncf %177 : vector<8x128xf32> to vector<8x128xbf16>
    %c0_52 = arith.constant 0 : index
    %c0_53 = arith.constant 0 : index
    %180 = vector.load %arg4[%c0_52, %c0_53] : memref<128x128xbf16, #tpu.memory_space<vmem>>, vector<128x128xbf16>
    %cst_54 = arith.constant dense<0.000000e+00> : vector<8x128xf32>
    %181 = tpu.matmul %179, %180, %cst_54 {dimension_numbers = #tpu.dot_dimension_numbers<[1], [0], [0], [1], [0, 0, 1, 1], [], []>} : vector<8x128xbf16>, vector<128x128xbf16>, vector<8x128xf32> -> vector<8x128xf32>
    %c0_55 = arith.constant 0 : index
    %c0_56 = arith.constant 0 : index
    %182 = vector.load %arg5[%c0_55, %c0_56] : memref<1x128xf32, #tpu.memory_space<vmem>>, vector<1x128xf32>
    %183 = vector.broadcast %182 : vector<1x128xf32> to vector<8x128xf32>
    %184 = arith.addf %181, %183 : vector<8x128xf32>
    %c0_57 = arith.constant 0 : index
    %c0_58 = arith.constant 0 : index
    %185 = vector.load %arg6[%c0_57, %c0_58] : memref<8x128xf32, #tpu.memory_space<vmem>>, vector<8x128xf32>
    tpu.vector_store %arg6[%c0_57, %c0_58], %184 {strides = array<i32>} : memref<8x128xf32, #tpu.memory_space<vmem>>, vector<8x128xf32>,
    return
  }
}

</mosaic_0001>

<bundles_post_ra>
// kernel: lstm_emg_forward.1
= control target key start
LH: loop header
LB: loop body
LE: loop exit
PB: predicated region body
PF: predicated region fallthrough
CT: control target
= control target key end

     0   :  { %13 = vsyncpa [#allocation4], 0  ;;  %s2673_s0 = inlined_call_operand.vmem [shape: f32[64,16], index: 0, kind: input, shape index: {}]   ;;  %s2674_s1 = inlined_call_operand.vmem [shape: bf16[16,512], index: 1, kind: input, shape index: {}]   ;;  %s2675_s2 = inlined_call_operand.hbm [shape: bf16[128,512], index: 2, kind: input, shape index: {}]   ;;  %s2676_s3 = inlined_call_operand.vmem [shape: f32[1,512], index: 3, kind: input, shape index: {}]   ;;  %s2677_s4 = inlined_call_operand.vmem [shape: bf16[128,128], index: 4, kind: input, shape index: {}]   ;;  %s2678_s5 = inlined_call_operand.vmem [shape: f32[1,128], index: 5, kind: input, shape index: {}]   ;;  %s2679_s6 = inlined_call_operand.hbm [shape: f32[8,128], index: 6, kind: output, shape index: {0}]   ;;  %s2680_s7 = inlined_call_operand.hbm [shape: f32[8,128], index: 7, kind: output, shape index: {1}]  }
   0x1   :  { %14 = vsyncpa [#allocation5], 0 }
   0x2   :  { %15 = vsyncpa [#allocation8], 0  ;;  %s24_s26 = sshll.u32 %s2675_s2, 4  ;;  %s2025_s27 = smov [#allocation3]   ;;  %s25_s26 = int_to_ptr.hbm [resolvable:$true] %s24_s26 }
   0x3   :  { %s26_s28 = sshll.u32 %s2025_s27, 4  ;;  %s2026_s29 = smov 256   ;;  %s27_s28 = int_to_ptr.vmem [resolvable:$true] %s26_s28 }
   0x4   :  { %s2027_s30 = smov 16  }
   0x5   :  { %32 = dma.hbm_to_vmem [thread:$0]  %s25_s26, 4096, %s27_s28, [#allocation4], %s2026_s29, %s2026_s29, %s2027_s30  }
   0x6   :  { %2019 = dma.done.wait [#allocation4], 4096  }
   0x7   :  { %2020 = vsyncadd [#allocation4], 4294963200  ;;  %v1553_v0 = vld [vmem:[%s2674_s1] sm:$0xf]  ;;  %v1769_v1 = vld [vmem:[%s2674_s1 + $0xc] sm:$0xf0] }
   0x8   :  { %v1561_v2 = vld [vmem:[%s2674_s1 + $0x8] sm:$0xf]  ;;  %v1554_v3 = vor.u32 %v1769_v1, %v1553_v0  ;;  %v1770_v4 = vld [vmem:[%s2674_s1 + $0x14] sm:$0xf0]  ;;  %v1768_v5 = vld [vmem:[%s2674_s1 + $0xc] sm:$0xf] }
   0x9   :  { %v1563_v6 = vld [vmem:[%s2674_s1 + $0x18] sm:$0xf0]  ;;  %v1562_v7 = vor.u32 %v1770_v4, %v1561_v2  ;;  %v44_v9 = vld [vmem:[%s2673_s0] sm:$0xff]  ;;  %v45_v10 = vld [vmem:[%s2673_s0 + $0x8] sm:$0xff]  ;;  %vm90_vm0 = vcmask 130048   ;;  %s1536_s9 = sshll.u32 %s2680_s7, 4  ;;  %s1537_s9 = int_to_ptr.hbm [resolvable:$true] %s1536_s9 }
   0xa   :  { %v1566_v8 = vor.u32 %v1768_v5, %v1563_v6  ;;  %v50_v11 = vld [vmem:[%s2673_s0 + $0x30] sm:$0xff]  ;;  %110 = vmatpush.bf16.msra.mxu0 %v1554_v3  ;;  %1811 = vmatpush.bf16.msra.mxu1 %v1554_v3  ;;  %v2101_v12 = vpack.c.bf16 %v45_v10, %v44_v9  ;;  %v51_v13 = vld [vmem:[%s2673_s0 + $0x38] sm:$0xff]  ;;  %v1767_v14 = vld [vmem:[%s2674_s1 + $0x4] sm:$0xf]  ;;  %s2030_s12 = smov [#allocation6]   ;;  %s1525_s14 = sshll.u32 %s2679_s6, 4  ;;  %s1526_s14 = int_to_ptr.hbm [resolvable:$true] %s1525_s14 }
   0xb   :  { %v1555_v15 = vld [vmem:[%s2674_s1 + $0x10] sm:$0xf0]  ;;  %168 = vmatpush.bf16.msra.mxu2 %v1562_v7  ;;  %v2112_v16 = vpack.c.bf16 %v51_v13, %v50_v11  ;;  %v1799_v18 = vld [vmem:[#allocation3 + $0xe4] sm:$0xf]  ;;  %v1697_v20 = vld [vmem:[#allocation3 + $0xe0] sm:$0xf] }
   0xc   :  { %197 = vmatpush.bf16.msra.mxu3 %v1566_v8  ;;  %v1558_v17 = vor.u32 %v1767_v14, %v1555_v15  ;;  %v1699_v19 = vld [vmem:[#allocation3 + $0xf0] sm:$0xf0]  ;;  %v1801_v21 = vld [vmem:[#allocation3 + $0xec] sm:$0xf0]  ;;  %v1681_v24 = vld [vmem:[#allocation3 + $0xc0] sm:$0xf] }
   0xd   :  { %1567 = vmatmul.msk.bf16.vlgmr.msra.gmra.mxu0 %vm90_vm0, %v2101_v12  ;;  %1570 = vmatmul.msk.bf16.vlgmr.msra.gmra.mxu1 %vm90_vm0, %v2112_v16  ;;  %v2118_v22 = vor.u32 %v1799_v18, %v1699_v19  ;;  %v2120_v23 = vor.u32 %v1801_v21, %v1697_v20  ;;  %v1797_v25 = vld [vmem:[#allocation3 + $0xcc] sm:$0xf0]  ;;  %v1705_v26 = vld [vmem:[#allocation3 + $0xe8] sm:$0xf]  ;;  %v1802_v27 = vld [vmem:[#allocation3 + $0xf4] sm:$0xf0] }
   0xe   :  { %139 = vmatpush.bf16.msrb.mxu1 %v1558_v17  ;;  %1575 = vmatmul.msk.bf16.vlgmr.msra.gmra.mxu2 %vm90_vm0, %v2101_v12  ;;  %v1795_v28 = vld [vmem:[#allocation3 + $0xc4] sm:$0xf]  ;;  %v1683_v29 = vld [vmem:[#allocation3 + $0xd0] sm:$0xf0]  ;;  %v2127_v30 = vor.u32 %v1802_v27, %v1705_v26  ;;  %v2132_v32 = vor.u32 %v1797_v25, %v1681_v24  ;;  %v1665_v33 = vld [vmem:[#allocation3 + $0xa0] sm:$0xf] }
   0xf   :  { %1579 = vmatmul.msk.bf16.vlgmr.msra.gmra.mxu3 %vm90_vm0, %v2101_v12  ;;  %v2129_v31 = vor.u32 %v1795_v28, %v1683_v29  ;;  %447 = vmatpush.bf16.msrb.mxu0 %v2120_v23  ;;  %v1689_v34 = vld [vmem:[#allocation3 + $0xc8] sm:$0xf]  ;;  %v1798_v35 = vld [vmem:[#allocation3 + $0xd4] sm:$0xf0]  ;;  %v1793_v36 = vld [vmem:[#allocation3 + $0xac] sm:$0xf0] }
  0x10   :  { %473 = vmatpush.bf16.msrb.mxu2 %v2127_v30  ;;  %v2135_v37 = vor.u32 %v1798_v35, %v1689_v34  ;;  %v1800_v38 = vld [vmem:[#allocation3 + $0xec] sm:$0xf]  ;;  %v1707_v39 = vld [vmem:[#allocation3 + $0xf8] sm:$0xf0]  ;;  %v1791_v41 = vld [vmem:[#allocation3 + $0xa4] sm:$0xf]  ;;  %v2143_v45 = vor.u32 %v1793_v36, %v1665_v33 }
  0x11   :  { %v2137_v40 = vor.u32 %v1800_v38, %v1707_v39  ;;  %v1667_v42 = vld [vmem:[#allocation3 + $0xb0] sm:$0xf0]  ;;  %v1649_v43 = vld [vmem:[#allocation3 + $0x80] sm:$0xf]  ;;  %v1789_v46 = vld [vmem:[#allocation3 + $0x8c] sm:$0xf0] }
  0x12   :  { %460 = vmatpush.bf16.msra.mxu1 %v2118_v22  ;;  %v2140_v44 = vor.u32 %v1791_v41, %v1667_v42  ;;  %v1673_v47 = vld [vmem:[#allocation3 + $0xa8] sm:$0xf]  ;;  %v1794_v48 = vld [vmem:[#allocation3 + $0xb4] sm:$0xf0]  ;;  %v1796_v50 = vld [vmem:[#allocation3 + $0xcc] sm:$0xf]  ;;  %v2161_v61 = vor.u32 %v1789_v46, %v1649_v43 }
  0x13   :  { %448 = vmatpush.bf16.msrb.mxu0 %v2132_v32  ;;  %486 = vmatpush.bf16.msrb.mxu3 %v2137_v40  ;;  %v2147_v49 = vor.u32 %v1794_v48, %v1673_v47  ;;  %v1691_v51 = vld [vmem:[#allocation3 + $0xd8] sm:$0xf0]  ;;  %v1787_v52 = vld [vmem:[#allocation3 + $0x84] sm:$0xf]  ;;  %v46_v53 = vld [vmem:[%s2673_s0 + $0x10] sm:$0xff]  ;;  %s1523_s13 = sshll.u32 %s2030_s12, 4  ;;  %s1524_s13 = int_to_ptr.vmem [resolvable:$true] %s1523_s13 }
  0x14   :  { %474 = vmatpush.bf16.msrb.mxu2 %v2135_v37  ;;  %v47_v54 = vld [vmem:[%s2673_s0 + $0x18] sm:$0xff]  ;;  %v2155_v55 = vor.u32 %v1796_v50, %v1691_v51  ;;  %v1651_v56 = vld [vmem:[#allocation3 + $0x90] sm:$0xf0]  ;;  %v1633_v57 = vld [vmem:[#allocation3 + $0x60] sm:$0xf] }
  0x15   :  { %v2158_v58 = vor.u32 %v1787_v52, %v1651_v56  ;;  %v1792_v59 = vld [vmem:[#allocation3 + $0xac] sm:$0xf]  ;;  %v1675_v60 = vld [vmem:[#allocation3 + $0xb8] sm:$0xf0]  ;;  %v1785_v62 = vld [vmem:[#allocation3 + $0x6c] sm:$0xf0]  ;;  %v2166_v2 = vpack.c.bf16 %v47_v54, %v46_v53 }
  0x16   :  { %461 = vmatpush.bf16.msra.mxu1 %v2129_v31  ;;  %v2164_v63 = vor.u32 %v1792_v59, %v1675_v60  ;;  %v1657_v0 = vld [vmem:[#allocation3 + $0x88] sm:$0xf]  ;;  %v1790_v1 = vld [vmem:[#allocation3 + $0x94] sm:$0xf0]  ;;  %v1788_v3 = vld [vmem:[#allocation3 + $0x8c] sm:$0xf]  ;;  %v2173_v6 = vor.u32 %v1785_v62, %v1633_v57 }
  0x17   :  { %449 = vmatpush.bf16.msrb.mxu0 %v2143_v45  ;;  %487 = vmatpush.bf16.msrb.mxu3 %v2155_v55  ;;  %v1659_v4 = vld [vmem:[#allocation3 + $0x98] sm:$0xf0]  ;;  %v2170_v5 = vor.u32 %v1790_v1, %v1657_v0  ;;  %v1617_v7 = vld [vmem:[#allocation3 + $0x40] sm:$0xf]  ;;  %v1781_v8 = vld [vmem:[#allocation3 + $0x4c] sm:$0xf0] }
  0x18   :  { %475 = vmatpush.bf16.msrb.mxu2 %v2147_v49  ;;  %v2176_v9 = vor.u32 %v1788_v3, %v1659_v4  ;;  %v1641_v10 = vld [vmem:[#allocation3 + $0x68] sm:$0xf]  ;;  %v1786_v11 = vld [vmem:[#allocation3 + $0x74] sm:$0xf0]  ;;  %v1784_v13 = vld [vmem:[#allocation3 + $0x6c] sm:$0xf] }
  0x19   :  { %v1643_v14 = vld [vmem:[#allocation3 + $0x78] sm:$0xf0]  ;;  %v1601_v15 = vld [vmem:[#allocation3 + $0x20] sm:$0xf]  ;;  %v1777_v17 = vld [vmem:[#allocation3 + $0x2c] sm:$0xf0]  ;;  %v2187_v20 = vor.u32 %v1786_v11, %v1641_v10 }
  0x1a   :  { %462 = vmatpush.bf16.msra.mxu1 %v2140_v44  ;;  %v1783_v18 = vld [vmem:[#allocation3 + $0x64] sm:$0xf]  ;;  %v1635_v19 = vld [vmem:[#allocation3 + $0x70] sm:$0xf0]  ;;  %v2195_v24 = vor.u32 %v1784_v13, %v1643_v14  ;;  %v1625_v25 = vld [vmem:[#allocation3 + $0x48] sm:$0xf]  ;;  %v2204_v36 = vor.u32 %v1777_v17, %v1601_v15 }
  0x1b   :  { %450 = vmatpush.bf16.msrb.mxu0 %v2161_v61  ;;  %488 = vmatpush.bf16.msrb.mxu3 %v2164_v63  ;;  %v2193_v21 = vor.u32 %v1783_v18, %v1635_v19  ;;  %v1782_v26 = vld [vmem:[#allocation3 + $0x54] sm:$0xf0]  ;;  %v1780_v27 = vld [vmem:[#allocation3 + $0x4c] sm:$0xf]  ;;  %v1627_v28 = vld [vmem:[#allocation3 + $0x58] sm:$0xf0] }
  0x1c   :  { %476 = vmatpush.bf16.msrb.mxu2 %v2170_v5  ;;  %v1779_v29 = vld [vmem:[#allocation3 + $0x44] sm:$0xf]  ;;  %v1619_v33 = vld [vmem:[#allocation3 + $0x50] sm:$0xf0]  ;;  %v2201_v35 = vor.u32 %v1782_v26, %v1625_v25  ;;  %v1585_v38 = vld [vmem:[#allocation3] sm:$0xf]  ;;  %v2207_v39 = vor.u32 %v1780_v27, %v1627_v28 }
  0x1d   :  { %1568 = vmatmul.msk.bf16.gmra.mxu0 %vm90_vm0, %v2166_v2  ;;  %1571 = vmatmul.msk.bf16.vlgmr.msrb.gmra.mxu1 %vm90_vm0, %v2101_v12  ;;  %v2190_v12 = vor.u32 %v1781_v8, %v1617_v7  ;;  %v2198_v34 = vor.u32 %v1779_v29, %v1619_v33  ;;  %v1609_v41 = vld [vmem:[#allocation3 + $0x28] sm:$0xf]  ;;  %v1778_v42 = vld [vmem:[#allocation3 + $0x34] sm:$0xf0]  ;;  %v1773_v43 = vld [vmem:[#allocation3 + $0xc] sm:$0xf0] }
  0x1e   :  { %463 = vmatpush.bf16.msra.mxu1 %v2158_v58  ;;  %1576 = vmatmul.msk.bf16.gmra.mxu2 %vm90_vm0, %v2166_v2  ;;  %v1776_v46 = vld [vmem:[#allocation3 + $0x2c] sm:$0xf]  ;;  %v1611_v47 = vld [vmem:[#allocation3 + $0x38] sm:$0xf0]  ;;  %v48_v48 = vld [vmem:[%s2673_s0 + $0x20] sm:$0xff]  ;;  %v2217_v51 = vor.u32 %v1778_v42, %v1609_v41  ;;  %v2220_v52 = vor.u32 %v1773_v43, %v1585_v38 }
  0x1f   :  { %1580 = vmatmul.msk.bf16.gmra.mxu3 %vm90_vm0, %v2166_v2  ;;  %451 = vmatpush.bf16.msrb.mxu0 %v2173_v6  ;;  %v49_v50 = vld [vmem:[%s2673_s0 + $0x28] sm:$0xff]  ;;  %v2223_v53 = vor.u32 %v1776_v46, %v1611_v47  ;;  %v1774_v56 = vld [vmem:[#allocation3 + $0x14] sm:$0xf0]  ;;  %v1595_v60 = vld [vmem:[#allocation3 + $0x18] sm:$0xf0] }
  0x20   :  { %489 = vmatpush.bf16.msrb.mxu3 %v2176_v9  ;;  %477 = vmatpush.bf16.msrb.mxu2 %v2187_v20  ;;  %v1593_v54 = vld [vmem:[#allocation3 + $0x8] sm:$0xf]  ;;  %v54_v57 = vpack.c.bf16 %v49_v50, %v48_v48  ;;  %v1772_v59 = vld [vmem:[#allocation3 + $0xc] sm:$0xf]  ;;  %v1775_v1 = vld [vmem:[#allocation3 + $0x24] sm:$0xf] }
  0x21   :  { %v2226_v62 = vor.u32 %v1774_v56, %v1593_v54  ;;  %v2230_v0 = vor.u32 %v1772_v59, %v1595_v60  ;;  %v1603_v3 = vld [vmem:[#allocation3 + $0x30] sm:$0xf0]  ;;  %v1771_v7 = vld [vmem:[#allocation3 + $0x4] sm:$0xf] }
  0x22   :  { %464 = vmatpush.bf16.msra.mxu1 %v2193_v21  ;;  %v2236_v4 = vor.u32 %v1775_v1, %v1603_v3  ;;  %v1587_v8 = vld [vmem:[#allocation3 + $0x10] sm:$0xf0] }
  0x23   :  { %452 = vmatpush.bf16.msrb.mxu0 %v2190_v12  ;;  %v2243_v10 = vor.u32 %v1771_v7, %v1587_v8 }
  0x24   :  { %490 = vmatpush.bf16.msrb.mxu3 %v2195_v24  ;;  %478 = vmatpush.bf16.msrb.mxu2 %v2201_v35 }
  0x26   :  { %465 = vmatpush.bf16.msra.mxu1 %v2198_v34 }
  0x27   :  { %453 = vmatpush.bf16.msrb.mxu0 %v2204_v36 }
  0x28   :  { %491 = vmatpush.bf16.msrb.mxu3 %v2207_v39  ;;  %479 = vmatpush.bf16.msrb.mxu2 %v2217_v51 }
  0x2a   :  { %466 = vmatpush.bf16.msra.mxu1 %v2236_v4 }
  0x2b   :  { %454 = vmatpush.bf16.msrb.mxu0 %v2220_v52 }
  0x2c   :  { %492 = vmatpush.bf16.msrb.mxu3 %v2223_v53  ;;  %480 = vmatpush.bf16.msrb.mxu2 %v2226_v62 }
  0x2d   :  { %1569 = vmatmul.msk.bf16.gmra.mxu0 %vm90_vm0, %v54_v57  ;;  %1572 = vmatmul.msk.bf16.gmra.mxu1 %vm90_vm0, %v2166_v2  ;;  %v2028_v2 = vmov 0  }
  0x2e   :  { %1577 = vmatmul.msk.bf16.gmra.mxu2 %vm90_vm0, %v54_v57  ;;  %467 = vmatpush.bf16.msra.mxu1 %v2243_v10 }
  0x2f   :  { %571 = vmatpush.bf16.msra.mxu0 %v2120_v23  ;;  %1581 = vmatmul.msk.bf16.gmra.mxu3 %vm90_vm0, %v54_v57 }
  0x30   :  { %493 = vmatpush.bf16.msrb.mxu3 %v2230_v0  ;;  %597 = vmatpush.bf16.msra.mxu2 %v2127_v30 }
  0x32   :  { %584 = vmatpush.bf16.msrb.mxu1 %v2118_v22 }
  0x33   :  { %572 = vmatpush.bf16.msra.mxu0 %v2132_v32 }
  0x34   :  { %610 = vmatpush.bf16.msra.mxu3 %v2137_v40  ;;  %598 = vmatpush.bf16.msra.mxu2 %v2135_v37 }
  0x36   :  { %585 = vmatpush.bf16.msrb.mxu1 %v2129_v31 }
  0x37   :  { %573 = vmatpush.bf16.msra.mxu0 %v2143_v45 }
  0x38   :  { %611 = vmatpush.bf16.msra.mxu3 %v2155_v55  ;;  %599 = vmatpush.bf16.msra.mxu2 %v2147_v49 }
  0x3a   :  { %586 = vmatpush.bf16.msrb.mxu1 %v2140_v44 }
  0x3b   :  { %574 = vmatpush.bf16.msra.mxu0 %v2161_v61 }
  0x3c   :  { %612 = vmatpush.bf16.msra.mxu3 %v2164_v63  ;;  %600 = vmatpush.bf16.msra.mxu2 %v2170_v5 }
  0x3d   :  { %1573 = vmatmul.msk.bf16.gmra.mxu1 %vm90_vm0, %v54_v57  ;;  %455 = vmatmul.bf16.vlgmr.msrb.gmra.mxu0 %v2028_v2 }
  0x3e   :  { %1578 = vmatmul.msk.bf16.gmra.mxu2 %vm90_vm0, %v2112_v16  ;;  %587 = vmatpush.bf16.msrb.mxu1 %v2158_v58 }
  0x3f   :  { %1582 = vmatmul.msk.bf16.gmra.mxu3 %vm90_vm0, %v2112_v16  ;;  %575 = vmatpush.bf16.msra.mxu0 %v2173_v6 }
  0x40   :  { %613 = vmatpush.bf16.msra.mxu3 %v2176_v9  ;;  %601 = vmatpush.bf16.msra.mxu2 %v2187_v20 }
  0x42   :  { %588 = vmatpush.bf16.msrb.mxu1 %v2193_v21 }
  0x43   :  { %576 = vmatpush.bf16.msra.mxu0 %v2190_v12 }
  0x44   :  { %614 = vmatpush.bf16.msra.mxu3 %v2195_v24  ;;  %602 = vmatpush.bf16.msra.mxu2 %v2201_v35 }
  0x46   :  { %589 = vmatpush.bf16.msrb.mxu1 %v2198_v34 }
  0x47   :  { %577 = vmatpush.bf16.msra.mxu0 %v2204_v36 }
  0x48   :  { %615 = vmatpush.bf16.msra.mxu3 %v2207_v39  ;;  %603 = vmatpush.bf16.msra.mxu2 %v2217_v51 }
  0x4a   :  { %590 = vmatpush.bf16.msrb.mxu1 %v2236_v4 }
  0x4b   :  { %578 = vmatpush.bf16.msra.mxu0 %v2220_v52 }
  0x4c   :  { %616 = vmatpush.bf16.msra.mxu3 %v2223_v53  ;;  %604 = vmatpush.bf16.msra.mxu2 %v2226_v62 }
  0x4d   :  { %1574 = vmatmul.msk.bf16.gmra.mxu1 %vm90_vm0, %v2112_v16  ;;  %v60_v16 = vld [vmem:[%s2676_s3] sm:$0xf] }
  0x4e   :  { %481 = vmatmul.bf16.vlgmr.msrb.gmra.mxu2 %v2028_v2  ;;  %591 = vmatpush.bf16.msrb.mxu1 %v2243_v10  ;;  %v2319_v11 = vperm.slane %v60_v16, 0  ;;  %v2333_v27 = vperm.slane %v60_v16, 2  ;;  %v2335_v28 = vperm.slane %v60_v16, 3  ;;  %v2348_v48 = vperm.slane %v60_v16, 1 }
  0x4f   :  { %695 = vmatpush.bf16.msrb.mxu0 %v2120_v23  ;;  %494 = vmatmul.bf16.vlgmr.msrb.gmra.mxu3 %v2028_v2 }
  0x50   :  { %617 = vmatpush.bf16.msra.mxu3 %v2230_v0  ;;  %721 = vmatpush.bf16.msrb.mxu2 %v2127_v30  ;;  %2682 = vst [vmem:[#allocation12_spill] sm:$0xff] %v2319_v11 }
  0x53   :  { %696 = vmatpush.bf16.msrb.mxu0 %v2132_v32 }
  0x54   :  { %734 = vmatpush.bf16.msrb.mxu3 %v2137_v40  ;;  %722 = vmatpush.bf16.msrb.mxu2 %v2135_v37 }
  0x57   :  { %697 = vmatpush.bf16.msrb.mxu0 %v2143_v45 }
  0x58   :  { %735 = vmatpush.bf16.msrb.mxu3 %v2155_v55  ;;  %723 = vmatpush.bf16.msrb.mxu2 %v2147_v49 }
  0x5b   :  { %698 = vmatpush.bf16.msrb.mxu0 %v2161_v61 }
  0x5c   :  { %736 = vmatpush.bf16.msrb.mxu3 %v2164_v63  ;;  %724 = vmatpush.bf16.msrb.mxu2 %v2170_v5 }
  0x5d   :  { %468 = vmatmul.bf16.vlgmr.msra.gmra.mxu1 %v2028_v2 }
  0x5e   :  { %708 = vmatpush.bf16.msra.mxu1 %v2118_v22 }
  0x5f   :  { %699 = vmatpush.bf16.msrb.mxu0 %v2173_v6 }
  0x60   :  { %737 = vmatpush.bf16.msrb.mxu3 %v2176_v9  ;;  %725 = vmatpush.bf16.msrb.mxu2 %v2187_v20 }
  0x62   :  { %709 = vmatpush.bf16.msra.mxu1 %v2129_v31 }
  0x63   :  { %700 = vmatpush.bf16.msrb.mxu0 %v2190_v12 }
  0x64   :  { %738 = vmatpush.bf16.msrb.mxu3 %v2195_v24  ;;  %726 = vmatpush.bf16.msrb.mxu2 %v2201_v35 }
  0x66   :  { %710 = vmatpush.bf16.msra.mxu1 %v2140_v44 }
  0x67   :  { %701 = vmatpush.bf16.msrb.mxu0 %v2204_v36 }
  0x68   :  { %739 = vmatpush.bf16.msrb.mxu3 %v2207_v39  ;;  %727 = vmatpush.bf16.msrb.mxu2 %v2217_v51 }
  0x6a   :  { %711 = vmatpush.bf16.msra.mxu1 %v2158_v58 }
  0x6b   :  { %702 = vmatpush.bf16.msrb.mxu0 %v2220_v52 }
  0x6c   :  { %740 = vmatpush.bf16.msrb.mxu3 %v2223_v53  ;;  %728 = vmatpush.bf16.msrb.mxu2 %v2226_v62 }
  0x6e   :  { %712 = vmatpush.bf16.msra.mxu1 %v2193_v21 }
  0x70   :  { %741 = vmatpush.bf16.msrb.mxu3 %v2230_v0 }
  0x72   :  { %713 = vmatpush.bf16.msra.mxu1 %v2198_v34 }
  0x76   :  { %714 = vmatpush.bf16.msra.mxu1 %v2236_v4 }
  0x7a   :  { %715 = vmatpush.bf16.msra.mxu1 %v2243_v10 }
  0x8a   :  { %v112_v13 = vpop.f32.mrf.mxu0  ;;  %v127_v14 = vpop.f32.mrf.mxu1 }
  0x8b   :  { %v2322_v15 = vadd.f32 %v127_v14, %v2319_v11 }
  0x8d   :  { %2683 = vst [vmem:[#allocation13_spill] sm:$0xff] %v2322_v15 }
  0x91   :  { %v2324_v17 = vpop.f32.mrf.mxu2 }
  0x92   :  { %v2326_v18 = vpop.f32.mrf.mxu3  ;;  %v114_v19 = vpop.f32.mrf.mxu0 }
  0x93   :  { %v2329_v25 = vadd.f32 %v114_v19, %v2319_v11  ;;  %v2331_v26 = vpop.f32.mrf.mxu1 }
  0x94   :  { %2684 = vst [vmem:[#allocation14_spill] sm:$0xff] %v2331_v26 }
  0x99   :  { %v172_v29 = vpop.f32.mrf.mxu2 }
  0x9a   :  { %v2338_v33 = vadd.f32 %v172_v29, %v2333_v27  ;;  %v201_v38 = vpop.f32.mrf.mxu3  ;;  %v117_v41 = vpop.f32.mrf.mxu0 }
  0x9b   :  { %v2341_v42 = vadd.f32 %v201_v38, %v2335_v28  ;;  %v2344_v43 = vadd.f32 %v117_v41, %v2319_v11  ;;  %v2346_v46 = vpop.f32.mrf.mxu1 }
  0xa1   :  { %v175_v47 = vpop.f32.mrf.mxu2 }
  0xa2   :  { %v2351_v50 = vadd.f32 %v175_v47, %v2333_v27  ;;  %v204_v54 = vpop.f32.mrf.mxu3  ;;  %v119_v56 = vpop.f32.mrf.mxu0 }
  0xa3   :  { %v2354_v57 = vadd.f32 %v204_v54, %v2335_v28  ;;  %v2357_v59 = vadd.f32 %v119_v56, %v2319_v11  ;;  %v143_v60 = vpop.f32.mrf.mxu1 }
  0xa4   :  { %v2360_v1 = vadd.f32 %v143_v60, %v2348_v48 }
  0xa9   :  { %v177_v3 = vpop.f32.mrf.mxu2 }
  0xaa   :  { %v2363_v7 = vadd.f32 %v177_v3, %v2333_v27  ;;  %v206_v8 = vpop.f32.mrf.mxu3  ;;  %v122_v2 = vpop.f32.mrf.mxu0 }
  0xab   :  { %v2366_v16 = vadd.f32 %v206_v8, %v2335_v28  ;;  %v2369_v14 = vadd.f32 %v122_v2, %v2319_v11  ;;  %v146_v19 = vpop.f32.mrf.mxu1  ;;  %v113_v2 = vadd.f32 %v112_v13, %v2319_v11 }
  0xac   :  { %2685 = vst [vmem:[#allocation15_spill] sm:$0xff] %v2363_v7  ;;  %v2372_v29 = vadd.f32 %v146_v19, %v2348_v48 }
  0xad   :  { %2686 = vst [vmem:[#allocation16_spill] sm:$0xff] %v2366_v16 }
  0xae   :  { %2687 = vst [vmem:[#allocation17_spill] sm:$0xff] %v2369_v14 }
  0xb1   :  { %v180_v38 = vpop.f32.mrf.mxu2 }
  0xb2   :  { %v2375_v41 = vadd.f32 %v180_v38, %v2333_v27  ;;  %v209_v47 = vpop.f32.mrf.mxu3  ;;  %v124_v54 = vpop.f32.mrf.mxu0 }
  0xb3   :  { %v2378_v56 = vadd.f32 %v209_v47, %v2335_v28  ;;  %v2381_v60 = vadd.f32 %v124_v54, %v2319_v11  ;;  %v148_v3 = vpop.f32.mrf.mxu1 }
  0xb4   :  { %2688 = vst [vmem:[#allocation18_spill] sm:$0xff] %v2375_v41  ;;  %v2384_v8 = vadd.f32 %v148_v3, %v2348_v48 }
  0xb5   :  { %2689 = vst [vmem:[#allocation19_spill] sm:$0xff] %v2378_v56 }
  0xb6   :  { %2690 = vst [vmem:[#allocation20_spill] sm:$0xff] %v2381_v60 }
  0xb9   :  { %v182_v19 = vpop.f32.mrf.mxu2 }
  0xba   :  { %v2388_v26 = vadd.f32 %v182_v19, %v2333_v27  ;;  %v211_v38 = vpop.f32.mrf.mxu3  ;;  %v456_v15 = vpop.f32.mrf.mxu0 }
  0xbb   :  { %v2391_v41 = vadd.f32 %v211_v38, %v2335_v28  ;;  %v151_v47 = vpop.f32.mrf.mxu1  ;;  %v499_v56 = vadd.f32 %v456_v15, %v113_v2 }
  0xbc   :  { %2691 = vst [vmem:[#allocation21_spill] sm:$0xff] %v2388_v26  ;;  %v2394_v54 = vadd.f32 %v151_v47, %v2348_v48 }
  0xbd   :  { %2692 = vst [vmem:[#allocation22_spill] sm:$0xff] %v2391_v41  ;;  %v1711_v60 = vmul.f32 -1.442695, %v499_v56 }
  0xbe   :  { %2693 = vst [vmem:[#allocation23_spill] sm:$0xff] %v2394_v54 }
  0xbf   :  { %1819 = vpow2.f32 %v1711_v60 }
  0xc1   :  { %v185_v3 = vpop.f32.mrf.mxu2 }
  0xc2   :  { %v2397_v14 = vadd.f32 %v185_v3, %v2333_v27  ;;  %v214_v13 = vpop.f32.mrf.mxu3  ;;  %v458_v11 = vpop.f32.mrf.mxu0 }
  0xc3   :  { %v2400_v19 = vadd.f32 %v214_v13, %v2335_v28  ;;  %v153_v26 = vpop.f32.mrf.mxu1 }
  0xc4   :  { %2694 = vst [vmem:[#allocation24_spill] sm:$0xff] %v2397_v14  ;;  %v2403_v38 = vadd.f32 %v153_v26, %v2348_v48  ;;  %v171_v26 = vadd.f32 %v2324_v17, %v2333_v27 }
  0xc5   :  { %2695 = vst [vmem:[#allocation25_spill] sm:$0xff] %v2400_v19  ;;  %v1820_v41 = vpop.eup %1819 }
  0xc6   :  { %2696 = vst [vmem:[#allocation26_spill] sm:$0xff] %v2403_v38  ;;  %v512_v15 = vadd.f32 1.0, %v1820_v41  ;;  %v200_v41 = vadd.f32 %v2326_v18, %v2335_v28 }
  0xc8   :  { %1821 = vrcp.f32 %v512_v15  ;;  %v524_v7 = vand.u32 2147483647, %v512_v15  ;;  %vm520_vm2 = vweird.f32 %v512_v15 }
  0xc9   :  { %v187_v2 = vpop.f32.mrf.mxu2 }
  0xca   :  { %v2406_v56 = vadd.f32 %v187_v2, %v2333_v27  ;;  %v216_v60 = vpop.f32.mrf.mxu3  ;;  %vm525_vm4 = vcmp.eq.f32.partialorder %v524_v7, 8.507059e+37 }
  0xcb   :  { %v2409_v47 = vadd.f32 %v216_v60, %v2335_v28  ;;  %v156_v3 = vpop.f32.mrf.mxu1 }
  0xcc   :  { %2697 = vst [vmem:[#allocation27_spill] sm:$0xff] %v2406_v56  ;;  %v2412_v11 = vadd.f32 %v156_v3, %v2348_v48  ;;  %v526_v56 = vand.u32 2147483648, %v512_v15 }
  0xcd   :  { %2698 = vst [vmem:[#allocation28_spill] sm:$0xff] %v2409_v47 }
  0xce   :  { %2699 = vst [vmem:[#allocation29_spill] sm:$0xff] %v2412_v11  ;;  %v1822_v13 = vpop.eup %1821  ;;  %v527_v18 = vor.u32 1.1754944e-38, %v526_v56 }
  0xcf   :  { %v516_v19 = vmul.f32 %v1822_v13, %v512_v15  ;;  %vm521_vm1 = vweird.f32 %v1822_v13 }
  0xd0   :  { %vm522_vm3 = vmor %vm520_vm2, %vm521_vm1 }
  0xd1   :  { %v517_v14 = vsub.f32 1.0, %v516_v19  ;;  %v482_v38 = vpop.f32.mrf.mxu2 }
  0xd2   :  { %v495_v2 = vpop.f32.mrf.mxu3  ;;  %v501_v54 = vadd.f32 %v482_v38, %v171_v26  ;;  %v142_v38 = vadd.f32 %v2346_v46, %v2348_v48 }
  0xd3   :  { %v502_v16 = vadd.f32 %v495_v2, %v200_v41  ;;  %v518_v60 = vmul.f32 %v1822_v13, %v517_v14  ;;  %v158_v47 = vpop.f32.mrf.mxu1 }
  0xd4   :  { %v2419_v3 = vadd.f32 %v158_v47, %v2348_v48  ;;  %v1713_v17 = vmul.f32 -1.442695, %v501_v54 }
  0xd5   :  { %v519_v11 = vadd.f32 %v1822_v13, %v518_v60  ;;  %1823 = vtanh.f32 %v502_v16 }
  0xd6   :  { %2700 = vst [vmem:[#allocation30_spill] sm:$0xff] %v2419_v3  ;;  %1825 = vpow2.f32 %v1713_v17 }
  0xd7   :  { %v523_v27 = vsel %vm522_vm3, %v1822_v13, %v519_v11 }
  0xd8   :  { %v528_v28 = vsel %vm525_vm4, %v527_v18, %v523_v27 }
  0xd9   :  { %v484_v19 = vpop.f32.mrf.mxu2 }
  0xda   :  { %v497_v14 = vpop.f32.mrf.mxu3 }
  0xdb   :  { %v1824_v26 = vpop.eup %1823  ;;  %v469_v41 = vpop.f32.mrf.mxu1 }
  0xdc   :  { %v562_v2 = vmul.f32 %v1824_v26, %v528_v28  ;;  %v500_v47 = vadd.f32 %v469_v41, %v142_v38  ;;  %v1826_v15 = vpop.eup %1825 }
  0xdd   :  { %v514_v60 = vadd.f32 1.0, %v1826_v15 }
  0xde   :  { %v1712_v3 = vmul.f32 -1.442695, %v500_v47 }
  0xdf   :  { %vm550_vm10 = vweird.f32 %v514_v60 }
  0xe0   :  { %1827 = vpow2.f32 %v1712_v3 }
  0xe1   :  { %1829 = vrcp.f32 %v514_v60 }
  0xe3   :  { %v471_v16 = vpop.f32.mrf.mxu1 }
  0xe4   :  { %v556_v16 = vand.u32 2147483648, %v514_v60 }
  0xe6   :  { %v1828_v54 = vpop.eup %1827 }
  0xe7   :  { %v513_v11 = vadd.f32 1.0, %v1828_v54  ;;  %v1830_v7 = vpop.eup %1829  ;;  %v554_v54 = vand.u32 2147483647, %v514_v60 }
  0xe8   :  { %v546_v27 = vmul.f32 %v1830_v7, %v514_v60  ;;  %vm551_vm9 = vweird.f32 %v1830_v7 }
  0xe9   :  { %1831 = vrcp.f32 %v513_v11  ;;  %v541_v48 = vand.u32 2147483648, %v513_v11  ;;  %v539_v17 = vand.u32 2147483647, %v513_v11  ;;  %vm535_vm6 = vweird.f32 %v513_v11  ;;  %vm552_vm11 = vmor %vm550_vm10, %vm551_vm9 }
  0xea   :  { %v547_v28 = vsub.f32 1.0, %v546_v27  ;;  %v557_v27 = vor.u32 1.1754944e-38, %v556_v16  ;;  %vm555_vm12 = vcmp.eq.f32.partialorder %v554_v54, 8.507059e+37 }
  0xeb   :  { %v542_v3 = vor.u32 1.1754944e-38, %v541_v48  ;;  %vm540_vm8 = vcmp.eq.f32.partialorder %v539_v17, 8.507059e+37 }
  0xec   :  { %v548_v26 = vmul.f32 %v1830_v7, %v547_v28 }
  0xee   :  { %v549_v15 = vadd.f32 %v1830_v7, %v548_v26 }
  0xef   :  { %v1832_v56 = vpop.eup %1831 }
  0xf0   :  { %v531_v13 = vmul.f32 %v1832_v56, %v513_v11  ;;  %vm536_vm5 = vweird.f32 %v1832_v56 }
  0xf1   :  { %vm537_vm7 = vmor %vm535_vm6, %vm536_vm5 }
  0xf2   :  { %v532_v46 = vsub.f32 1.0, %v531_v13  ;;  %v553_v13 = vsel %vm552_vm11, %v1830_v7, %v549_v15 }
  0xf4   :  { %v533_v18 = vmul.f32 %v1832_v56, %v532_v46  ;;  %v558_v46 = vsel %vm555_vm12, %v557_v27, %v553_v13 }
  0xf6   :  { %v534_v19 = vadd.f32 %v1832_v56, %v533_v18 }
  0xf8   :  { %v538_v38 = vsel %vm537_vm7, %v1832_v56, %v534_v19 }
  0xf9   :  { %v543_v14 = vsel %vm540_vm8, %v542_v3, %v538_v38 }
  0xfa   :  { %v561_v41 = vmul.f32 0.0, %v543_v14 }
  0xfc   :  { %v2423_v47 = vadd.f32 %v562_v2, %v561_v41 }
  0xfe   :  { %1833 = vtanh.f32 %v2423_v47 }
 0x104   :  { %v1834_v11 = vpop.eup %1833 }
 0x105   :  { %v565_v56 = vmul.f32 %v1834_v11, %v558_v46 }
 0x107   :  { %v570_v48 = vpack.c.bf16 %v565_v56, %v565_v56 }
 0x109   :  { %579 = vmatmul.bf16.vlgmr.msra.gmra.mxu0 %v570_v48  ;;  %592 = vmatmul.bf16.vlgmr.msrb.gmra.mxu1 %v570_v48 }
 0x10a   :  { %605 = vmatmul.bf16.vlgmr.msra.gmra.mxu2 %v570_v48  ;;  %618 = vmatmul.bf16.vlgmr.msra.gmra.mxu3 %v570_v48 }
 0x10b   :  { %819 = vmatpush.bf16.msra.mxu0 %v2120_v23  ;;  %832 = vmatpush.bf16.msrb.mxu1 %v2118_v22 }
 0x10c   :  { %845 = vmatpush.bf16.msra.mxu2 %v2127_v30  ;;  %858 = vmatpush.bf16.msra.mxu3 %v2137_v40 }
 0x10f   :  { %820 = vmatpush.bf16.msra.mxu0 %v2132_v32  ;;  %833 = vmatpush.bf16.msrb.mxu1 %v2129_v31 }
 0x110   :  { %846 = vmatpush.bf16.msra.mxu2 %v2135_v37  ;;  %859 = vmatpush.bf16.msra.mxu3 %v2155_v55 }
 0x113   :  { %821 = vmatpush.bf16.msra.mxu0 %v2143_v45  ;;  %834 = vmatpush.bf16.msrb.mxu1 %v2140_v44 }
 0x114   :  { %847 = vmatpush.bf16.msra.mxu2 %v2147_v49  ;;  %860 = vmatpush.bf16.msra.mxu3 %v2164_v63 }
 0x117   :  { %822 = vmatpush.bf16.msra.mxu0 %v2161_v61  ;;  %835 = vmatpush.bf16.msrb.mxu1 %v2158_v58 }
 0x118   :  { %848 = vmatpush.bf16.msra.mxu2 %v2170_v5  ;;  %861 = vmatpush.bf16.msra.mxu3 %v2176_v9 }
 0x11b   :  { %823 = vmatpush.bf16.msra.mxu0 %v2173_v6  ;;  %836 = vmatpush.bf16.msrb.mxu1 %v2193_v21 }
 0x11c   :  { %849 = vmatpush.bf16.msra.mxu2 %v2187_v20  ;;  %862 = vmatpush.bf16.msra.mxu3 %v2195_v24 }
 0x11f   :  { %824 = vmatpush.bf16.msra.mxu0 %v2190_v12  ;;  %837 = vmatpush.bf16.msrb.mxu1 %v2198_v34 }
 0x120   :  { %850 = vmatpush.bf16.msra.mxu2 %v2201_v35  ;;  %863 = vmatpush.bf16.msra.mxu3 %v2207_v39 }
 0x123   :  { %825 = vmatpush.bf16.msra.mxu0 %v2204_v36  ;;  %838 = vmatpush.bf16.msrb.mxu1 %v2236_v4 }
 0x124   :  { %851 = vmatpush.bf16.msra.mxu2 %v2217_v51  ;;  %864 = vmatpush.bf16.msra.mxu3 %v2223_v53 }
 0x127   :  { %826 = vmatpush.bf16.msra.mxu0 %v2220_v52  ;;  %839 = vmatpush.bf16.msrb.mxu1 %v2243_v10 }
 0x128   :  { %852 = vmatpush.bf16.msra.mxu2 %v2226_v62  ;;  %865 = vmatpush.bf16.msra.mxu3 %v2230_v0 }
 0x186   :  { %v580_v2 = vpop.f32.mrf.mxu0  ;;  %v593_v60 = vpop.f32.mrf.mxu1 }
 0x187   :  { %v623_v7 = vadd.f32 %v580_v2, %v2329_v25  ;;  %v624_v18 = vadd.f32 %v593_v60, %v2360_v1 }
 0x189   :  { %v1714_v17 = vmul.f32 -1.442695, %v623_v7  ;;  %v1715_v28 = vmul.f32 -1.442695, %v624_v18 }
 0x18b   :  { %1835 = vpow2.f32 %v1714_v17 }
 0x18c   :  { %1837 = vpow2.f32 %v1715_v28 }
 0x18d   :  { %v606_v19 = vpop.f32.mrf.mxu2  ;;  %v619_v3 = vpop.f32.mrf.mxu3 }
 0x18e   :  { %v625_v38 = vadd.f32 %v606_v19, %v2338_v33  ;;  %v582_v14 = vpop.f32.mrf.mxu0  ;;  %v595_v26 = vpop.f32.mrf.mxu1  ;;  %v626_v56 = vadd.f32 %v619_v3, %v2341_v42 }
 0x190   :  { %v1716_v41 = vmul.f32 -1.442695, %v625_v38 }
 0x191   :  { %v1836_v15 = vpop.eup %1835 }
 0x192   :  { %v1838_v16 = vpop.eup %1837  ;;  %v636_v54 = vadd.f32 1.0, %v1836_v15  ;;  %1839 = vpow2.f32 %v1716_v41 }
 0x193   :  { %v637_v13 = vadd.f32 1.0, %v1838_v16 }
 0x194   :  { %1841 = vrcp.f32 %v636_v54  ;;  %v650_v18 = vand.u32 2147483648, %v636_v54  ;;  %v648_v19 = vand.u32 2147483647, %v636_v54  ;;  %vm644_vm15 = vweird.f32 %v636_v54 }
 0x195   :  { %1843 = vrcp.f32 %v637_v13  ;;  %v608_v25 = vpop.f32.mrf.mxu2  ;;  %v621_v1 = vpop.f32.mrf.mxu3  ;;  %v665_v17 = vand.u32 2147483648, %v637_v13  ;;  %v663_v14 = vand.u32 2147483647, %v637_v13  ;;  %vm659_vm0 = vweird.f32 %v637_v13 }
 0x196   :  { %v651_v3 = vor.u32 1.1754944e-38, %v650_v18  ;;  %vm649_vm3 = vcmp.eq.f32.partialorder %v648_v19, 8.507059e+37 }
 0x197   :  { %v666_v16 = vor.u32 1.1754944e-38, %v665_v17  ;;  %vm664_vm4 = vcmp.eq.f32.partialorder %v663_v14, 8.507059e+37 }
 0x198   :  { %v1840_v27 = vpop.eup %1839 }
 0x199   :  { %v638_v11 = vadd.f32 1.0, %v1840_v27 }
 0x19a   :  { %v1842_v46 = vpop.eup %1841 }
 0x19b   :  { %v1844_v48 = vpop.eup %1843  ;;  %v640_v2 = vmul.f32 %v1842_v46, %v636_v54  ;;  %1845 = vrcp.f32 %v638_v11  ;;  %vm645_vm13 = vweird.f32 %v1842_v46  ;;  %v680_v18 = vand.u32 2147483648, %v638_v11 }
 0x19c   :  { %v655_v33 = vmul.f32 %v1844_v48, %v637_v13  ;;  %1847 = vtanh.f32 %v626_v56  ;;  %vm660_vm14 = vweird.f32 %v1844_v48  ;;  %vm646_vm1 = vmor %vm644_vm15, %vm645_vm13  ;;  %vm674_vm6 = vweird.f32 %v638_v11 }
 0x19d   :  { %v641_v60 = vsub.f32 1.0, %v640_v2  ;;  %vm661_vm2 = vmor %vm659_vm0, %vm660_vm14  ;;  %v681_v19 = vor.u32 1.1754944e-38, %v680_v18 }
 0x19e   :  { %v656_v7 = vsub.f32 1.0, %v655_v33 }
 0x19f   :  { %v642_v28 = vmul.f32 %v1842_v46, %v641_v60 }
 0x1a0   :  { %v657_v38 = vmul.f32 %v1844_v48, %v656_v7 }
 0x1a1   :  { %v1846_v26 = vpop.eup %1845  ;;  %v643_v41 = vadd.f32 %v1842_v46, %v642_v28 }
 0x1a2   :  { %v670_v42 = vmul.f32 %v1846_v26, %v638_v11  ;;  %v658_v15 = vadd.f32 %v1844_v48, %v657_v38  ;;  %v1848_v1 = vpop.eup %1847  ;;  %vm675_vm5 = vweird.f32 %v1846_v26 }
 0x1a3   :  { %v647_v25 = vsel %vm646_vm1, %v1842_v46, %v643_v41  ;;  %v678_v46 = vand.u32 2147483647, %v638_v11  ;;  %vm676_vm7 = vmor %vm674_vm6, %vm675_vm5 }
 0x1a4   :  { %v671_v27 = vsub.f32 1.0, %v670_v42  ;;  %v652_v56 = vsel %vm649_vm3, %v651_v3, %v647_v25  ;;  %v662_v2 = vsel %vm661_vm2, %v1844_v48, %v658_v15 }
 0x1a5   :  { %v667_v33 = vsel %vm664_vm4, %v666_v16, %v662_v2  ;;  %v686_v60 = vmul.f32 %v1848_v1, %v652_v56  ;;  %vm679_vm8 = vcmp.eq.f32.partialorder %v678_v46, 8.507059e+37 }
 0x1a6   :  { %v685_v7 = vmul.f32 %v667_v33, %v2423_v47  ;;  %v672_v28 = vmul.f32 %v1846_v26, %v671_v27 }
 0x1a8   :  { %v2463_v54 = vadd.f32 %v686_v60, %v685_v7  ;;  %v673_v13 = vadd.f32 %v1846_v26, %v672_v28 }
 0x1aa   :  { %1849 = vtanh.f32 %v2463_v54  ;;  %v677_v17 = vsel %vm676_vm7, %v1846_v26, %v673_v13 }
 0x1ab   :  { %v682_v38 = vsel %vm679_vm8, %v681_v19, %v677_v17 }
 0x1b0   :  { %v1850_v48 = vpop.eup %1849 }
 0x1b1   :  { %v689_v14 = vmul.f32 %v1850_v48, %v682_v38 }
 0x1b3   :  { %v694_v41 = vpack.c.bf16 %v689_v14, %v689_v14 }
 0x1b5   :  { %703 = vmatmul.bf16.vlgmr.msrb.gmra.mxu0 %v694_v41  ;;  %716 = vmatmul.bf16.vlgmr.msra.gmra.mxu1 %v694_v41 }
 0x1b6   :  { %729 = vmatmul.bf16.vlgmr.msrb.gmra.mxu2 %v694_v41  ;;  %742 = vmatmul.bf16.vlgmr.msrb.gmra.mxu3 %v694_v41 }
 0x1b7   :  { %943 = vmatpush.bf16.msrb.mxu0 %v2120_v23  ;;  %956 = vmatpush.bf16.msra.mxu1 %v2118_v22 }
 0x1b8   :  { %969 = vmatpush.bf16.msrb.mxu2 %v2127_v30  ;;  %982 = vmatpush.bf16.msrb.mxu3 %v2137_v40 }
 0x1bb   :  { %944 = vmatpush.bf16.msrb.mxu0 %v2132_v32  ;;  %957 = vmatpush.bf16.msra.mxu1 %v2129_v31 }
 0x1bc   :  { %970 = vmatpush.bf16.msrb.mxu2 %v2135_v37  ;;  %983 = vmatpush.bf16.msrb.mxu3 %v2155_v55 }
 0x1bf   :  { %945 = vmatpush.bf16.msrb.mxu0 %v2143_v45  ;;  %958 = vmatpush.bf16.msra.mxu1 %v2140_v44 }
 0x1c0   :  { %971 = vmatpush.bf16.msrb.mxu2 %v2147_v49  ;;  %984 = vmatpush.bf16.msrb.mxu3 %v2164_v63 }
 0x1c3   :  { %946 = vmatpush.bf16.msrb.mxu0 %v2161_v61  ;;  %959 = vmatpush.bf16.msra.mxu1 %v2158_v58 }
 0x1c4   :  { %972 = vmatpush.bf16.msrb.mxu2 %v2170_v5  ;;  %985 = vmatpush.bf16.msrb.mxu3 %v2176_v9 }
 0x1c7   :  { %947 = vmatpush.bf16.msrb.mxu0 %v2173_v6  ;;  %960 = vmatpush.bf16.msra.mxu1 %v2193_v21 }
 0x1c8   :  { %973 = vmatpush.bf16.msrb.mxu2 %v2187_v20  ;;  %986 = vmatpush.bf16.msrb.mxu3 %v2195_v24 }
 0x1cb   :  { %948 = vmatpush.bf16.msrb.mxu0 %v2190_v12  ;;  %961 = vmatpush.bf16.msra.mxu1 %v2198_v34 }
 0x1cc   :  { %974 = vmatpush.bf16.msrb.mxu2 %v2201_v35  ;;  %987 = vmatpush.bf16.msrb.mxu3 %v2207_v39 }
 0x1cf   :  { %949 = vmatpush.bf16.msrb.mxu0 %v2204_v36  ;;  %962 = vmatpush.bf16.msra.mxu1 %v2236_v4 }
 0x1d0   :  { %975 = vmatpush.bf16.msrb.mxu2 %v2217_v51  ;;  %988 = vmatpush.bf16.msrb.mxu3 %v2223_v53 }
 0x1d3   :  { %950 = vmatpush.bf16.msrb.mxu0 %v2220_v52  ;;  %963 = vmatpush.bf16.msra.mxu1 %v2243_v10 }
 0x1d4   :  { %976 = vmatpush.bf16.msrb.mxu2 %v2226_v62  ;;  %989 = vmatpush.bf16.msrb.mxu3 %v2230_v0 }
 0x232   :  { %v704_v47 = vpop.f32.mrf.mxu0  ;;  %v717_v11 = vpop.f32.mrf.mxu1 }
 0x233   :  { %v747_v26 = vadd.f32 %v704_v47, %v2344_v43  ;;  %v748_v42 = vadd.f32 %v717_v11, %v2372_v29 }
 0x235   :  { %v1717_v3 = vmul.f32 -1.442695, %v747_v26  ;;  %v1718_v15 = vmul.f32 -1.442695, %v748_v42 }
 0x237   :  { %1851 = vpow2.f32 %v1717_v3 }
 0x238   :  { %1853 = vpow2.f32 %v1718_v15 }
 0x239   :  { %v730_v16 = vpop.f32.mrf.mxu2  ;;  %v743_v25 = vpop.f32.mrf.mxu3 }
 0x23a   :  { %v749_v1 = vadd.f32 %v730_v16, %v2351_v50  ;;  %v706_v27 = vpop.f32.mrf.mxu0  ;;  %v719_v56 = vpop.f32.mrf.mxu1  ;;  %v750_v17 = vadd.f32 %v743_v25, %v2354_v57 }
 0x23c   :  { %v1719_v2 = vmul.f32 -1.442695, %v749_v1 }
 0x23d   :  { %v1852_v33 = vpop.eup %1851 }
 0x23e   :  { %v1854_v60 = vpop.eup %1853  ;;  %v760_v7 = vadd.f32 1.0, %v1852_v33  ;;  %1855 = vpow2.f32 %v1719_v2 }
 0x23f   :  { %v761_v28 = vadd.f32 1.0, %v1854_v60 }
 0x240   :  { %1857 = vrcp.f32 %v760_v7  ;;  %v774_v41 = vand.u32 2147483648, %v760_v7  ;;  %v772_v26 = vand.u32 2147483647, %v760_v7  ;;  %vm768_vm11 = vweird.f32 %v760_v7 }
 0x241   :  { %1859 = vrcp.f32 %v761_v28  ;;  %v732_v43 = vpop.f32.mrf.mxu2  ;;  %v745_v29 = vpop.f32.mrf.mxu3  ;;  %v789_v47 = vand.u32 2147483648, %v761_v28  ;;  %v787_v3 = vand.u32 2147483647, %v761_v28  ;;  %vm783_vm12 = vweird.f32 %v761_v28 }
 0x242   :  { %v775_v25 = vor.u32 1.1754944e-38, %v774_v41  ;;  %vm773_vm15 = vcmp.eq.f32.partialorder %v772_v26, 8.507059e+37 }
 0x243   :  { %v790_v27 = vor.u32 1.1754944e-38, %v789_v47  ;;  %vm788_vm0 = vcmp.eq.f32.partialorder %v787_v3, 8.507059e+37 }
 0x244   :  { %v1856_v13 = vpop.eup %1855 }
 0x245   :  { %v762_v18 = vadd.f32 1.0, %v1856_v13 }
 0x246   :  { %v1858_v46 = vpop.eup %1857 }
 0x247   :  { %v1860_v19 = vpop.eup %1859  ;;  %v764_v48 = vmul.f32 %v1858_v46, %v760_v7  ;;  %1861 = vrcp.f32 %v762_v18  ;;  %vm769_vm9 = vweird.f32 %v1858_v46  ;;  %vm798_vm2 = vweird.f32 %v762_v18 }
 0x248   :  { %v779_v50 = vmul.f32 %v1860_v19, %v761_v28  ;;  %1863 = vtanh.f32 %v750_v17  ;;  %vm784_vm10 = vweird.f32 %v1860_v19  ;;  %vm770_vm13 = vmor %vm768_vm11, %vm769_vm9 }
 0x249   :  { %v765_v38 = vsub.f32 1.0, %v764_v48  ;;  %vm785_vm14 = vmor %vm783_vm12, %vm784_vm10 }
 0x24a   :  { %v780_v14 = vsub.f32 1.0, %v779_v50  ;;  %v804_v50 = vand.u32 2147483648, %v762_v18 }
 0x24b   :  { %v766_v11 = vmul.f32 %v1858_v46, %v765_v38 }
 0x24c   :  { %v781_v42 = vmul.f32 %v1860_v19, %v780_v14  ;;  %v805_v14 = vor.u32 1.1754944e-38, %v804_v50 }
 0x24d   :  { %v1862_v15 = vpop.eup %1861  ;;  %v767_v16 = vadd.f32 %v1858_v46, %v766_v11 }
 0x24e   :  { %v794_v57 = vmul.f32 %v1862_v15, %v762_v18  ;;  %v782_v1 = vadd.f32 %v1860_v19, %v781_v42  ;;  %v1864_v2 = vpop.eup %1863  ;;  %vm799_vm1 = vweird.f32 %v1862_v15 }
 0x24f   :  { %v771_v56 = vsel %vm770_vm13, %v1858_v46, %v767_v16  ;;  %v802_v46 = vand.u32 2147483647, %v762_v18  ;;  %vm800_vm3 = vmor %vm798_vm2, %vm799_vm1 }
 0x250   :  { %v795_v33 = vsub.f32 1.0, %v794_v57  ;;  %v776_v60 = vsel %vm773_vm15, %v775_v25, %v771_v56  ;;  %v786_v43 = vsel %vm785_vm14, %v1860_v19, %v782_v1  ;;  %v2701_v25 = vld [vmem:[#allocation15_spill] sm:$0xff] }
 0x251   :  { %v791_v29 = vsel %vm788_vm0, %v790_v27, %v786_v43  ;;  %v810_v13 = vmul.f32 %v1864_v2, %v776_v60  ;;  %vm803_vm4 = vcmp.eq.f32.partialorder %v802_v46, 8.507059e+37 }
 0x252   :  { %v809_v17 = vmul.f32 %v791_v29, %v2463_v54  ;;  %v796_v48 = vmul.f32 %v1862_v15, %v795_v33 }
 0x254   :  { %v2503_v7 = vadd.f32 %v810_v13, %v809_v17  ;;  %v797_v28 = vadd.f32 %v1862_v15, %v796_v48 }
 0x256   :  { %1865 = vtanh.f32 %v2503_v7  ;;  %v801_v38 = vsel %vm800_vm3, %v1862_v15, %v797_v28  ;;  %v2702_v28 = vld [vmem:[#allocation16_spill] sm:$0xff] }
 0x257   :  { %v806_v41 = vsel %vm803_vm4, %v805_v14, %v801_v38 }
 0x25c   :  { %v1866_v19 = vpop.eup %1865 }
 0x25d   :  { %v813_v47 = vmul.f32 %v1866_v19, %v806_v41 }
 0x25f   :  { %v818_v11 = vpack.c.bf16 %v813_v47, %v813_v47 }
 0x261   :  { %827 = vmatmul.bf16.vlgmr.msra.gmra.mxu0 %v818_v11  ;;  %840 = vmatmul.bf16.vlgmr.msrb.gmra.mxu1 %v818_v11 }
 0x262   :  { %853 = vmatmul.bf16.vlgmr.msra.gmra.mxu2 %v818_v11  ;;  %866 = vmatmul.bf16.vlgmr.msra.gmra.mxu3 %v818_v11 }
 0x263   :  { %1067 = vmatpush.bf16.msra.mxu0 %v2120_v23  ;;  %1080 = vmatpush.bf16.msrb.mxu1 %v2118_v22 }
 0x264   :  { %1093 = vmatpush.bf16.msra.mxu2 %v2127_v30  ;;  %1106 = vmatpush.bf16.msra.mxu3 %v2137_v40 }
 0x267   :  { %1068 = vmatpush.bf16.msra.mxu0 %v2132_v32  ;;  %1081 = vmatpush.bf16.msrb.mxu1 %v2129_v31 }
 0x268   :  { %1094 = vmatpush.bf16.msra.mxu2 %v2135_v37  ;;  %1107 = vmatpush.bf16.msra.mxu3 %v2155_v55 }
 0x26b   :  { %1069 = vmatpush.bf16.msra.mxu0 %v2143_v45  ;;  %1082 = vmatpush.bf16.msrb.mxu1 %v2140_v44 }
 0x26c   :  { %1095 = vmatpush.bf16.msra.mxu2 %v2147_v49  ;;  %1108 = vmatpush.bf16.msra.mxu3 %v2164_v63 }
 0x26f   :  { %1070 = vmatpush.bf16.msra.mxu0 %v2161_v61  ;;  %1083 = vmatpush.bf16.msrb.mxu1 %v2158_v58 }
 0x270   :  { %1096 = vmatpush.bf16.msra.mxu2 %v2170_v5  ;;  %1109 = vmatpush.bf16.msra.mxu3 %v2176_v9 }
 0x273   :  { %1071 = vmatpush.bf16.msra.mxu0 %v2173_v6  ;;  %1084 = vmatpush.bf16.msrb.mxu1 %v2193_v21 }
 0x274   :  { %1097 = vmatpush.bf16.msra.mxu2 %v2187_v20  ;;  %1110 = vmatpush.bf16.msra.mxu3 %v2195_v24 }
 0x277   :  { %1072 = vmatpush.bf16.msra.mxu0 %v2190_v12  ;;  %1085 = vmatpush.bf16.msrb.mxu1 %v2198_v34 }
 0x278   :  { %1098 = vmatpush.bf16.msra.mxu2 %v2201_v35  ;;  %1111 = vmatpush.bf16.msra.mxu3 %v2207_v39 }
 0x27b   :  { %1073 = vmatpush.bf16.msra.mxu0 %v2204_v36  ;;  %1086 = vmatpush.bf16.msrb.mxu1 %v2236_v4 }
 0x27c   :  { %1099 = vmatpush.bf16.msra.mxu2 %v2217_v51  ;;  %1112 = vmatpush.bf16.msra.mxu3 %v2223_v53 }
 0x27f   :  { %1074 = vmatpush.bf16.msra.mxu0 %v2220_v52  ;;  %1087 = vmatpush.bf16.msrb.mxu1 %v2243_v10 }
 0x280   :  { %1100 = vmatpush.bf16.msra.mxu2 %v2226_v62  ;;  %1113 = vmatpush.bf16.msra.mxu3 %v2230_v0 }
 0x2de   :  { %v828_v54 = vpop.f32.mrf.mxu0  ;;  %v841_v18 = vpop.f32.mrf.mxu1 }
 0x2df   :  { %v871_v26 = vadd.f32 %v828_v54, %v2357_v59  ;;  %v872_v42 = vadd.f32 %v841_v18, %v2384_v8 }
 0x2e1   :  { %v1720_v3 = vmul.f32 -1.442695, %v871_v26  ;;  %v1721_v15 = vmul.f32 -1.442695, %v872_v42 }
 0x2e3   :  { %1867 = vpow2.f32 %v1720_v3 }
 0x2e4   :  { %1869 = vpow2.f32 %v1721_v15 }
 0x2e5   :  { %v854_v16 = vpop.f32.mrf.mxu2  ;;  %v867_v57 = vpop.f32.mrf.mxu3 }
 0x2e6   :  { %v873_v1 = vadd.f32 %v854_v16, %v2701_v25  ;;  %v830_v27 = vpop.f32.mrf.mxu0  ;;  %v843_v56 = vpop.f32.mrf.mxu1  ;;  %v874_v50 = vadd.f32 %v867_v57, %v2702_v28 }
 0x2e8   :  { %v1722_v2 = vmul.f32 -1.442695, %v873_v1 }
 0x2e9   :  { %v1868_v33 = vpop.eup %1867 }
 0x2ea   :  { %v1870_v60 = vpop.eup %1869  ;;  %v884_v43 = vadd.f32 1.0, %v1868_v33  ;;  %1871 = vpow2.f32 %v1722_v2 }
 0x2eb   :  { %v885_v29 = vadd.f32 1.0, %v1870_v60 }
 0x2ec   :  { %1873 = vrcp.f32 %v884_v43  ;;  %v898_v47 = vand.u32 2147483648, %v884_v43  ;;  %v896_v18 = vand.u32 2147483647, %v884_v43  ;;  %vm892_vm7 = vweird.f32 %v884_v43 }
 0x2ed   :  { %1875 = vrcp.f32 %v885_v29  ;;  %v856_v59 = vpop.f32.mrf.mxu2  ;;  %v869_v8 = vpop.f32.mrf.mxu3  ;;  %v913_v11 = vand.u32 2147483648, %v885_v29  ;;  %v911_v42 = vand.u32 2147483647, %v885_v29  ;;  %vm907_vm8 = vweird.f32 %v885_v29 }
 0x2ee   :  { %v899_v57 = vor.u32 1.1754944e-38, %v898_v47  ;;  %vm897_vm11 = vcmp.eq.f32.partialorder %v896_v18, 8.507059e+37  ;;  %v2704_v18 = vld [vmem:[#allocation23_spill] sm:$0xff] }
 0x2ef   :  { %v914_v1 = vor.u32 1.1754944e-38, %v913_v11  ;;  %vm912_vm12 = vcmp.eq.f32.partialorder %v911_v42, 8.507059e+37  ;;  %v2703_v11 = vld [vmem:[#allocation17_spill] sm:$0xff] }
 0x2f0   :  { %v1872_v13 = vpop.eup %1871 }
 0x2f1   :  { %v886_v17 = vadd.f32 1.0, %v1872_v13 }
 0x2f2   :  { %v1874_v48 = vpop.eup %1873 }
 0x2f3   :  { %v1876_v46 = vpop.eup %1875  ;;  %v888_v38 = vmul.f32 %v1874_v48, %v884_v43  ;;  %1877 = vrcp.f32 %v886_v17  ;;  %vm893_vm5 = vweird.f32 %v1874_v48  ;;  %vm922_vm14 = vweird.f32 %v886_v17 }
 0x2f4   :  { %v903_v14 = vmul.f32 %v1876_v46, %v885_v29  ;;  %1879 = vtanh.f32 %v874_v50  ;;  %vm908_vm6 = vweird.f32 %v1876_v46  ;;  %vm894_vm9 = vmor %vm892_vm7, %vm893_vm5  ;;  %v928_v50 = vand.u32 2147483648, %v886_v17 }
 0x2f5   :  { %v889_v19 = vsub.f32 1.0, %v888_v38  ;;  %vm909_vm10 = vmor %vm907_vm8, %vm908_vm6 }
 0x2f6   :  { %v904_v41 = vsub.f32 1.0, %v903_v14  ;;  %v929_v14 = vor.u32 1.1754944e-38, %v928_v50 }
 0x2f7   :  { %v890_v54 = vmul.f32 %v1874_v48, %v889_v19 }
 0x2f8   :  { %v905_v26 = vmul.f32 %v1876_v46, %v904_v41 }
 0x2f9   :  { %v1878_v3 = vpop.eup %1877  ;;  %v891_v15 = vadd.f32 %v1874_v48, %v890_v54 }
 0x2fa   :  { %v918_v16 = vmul.f32 %v1878_v3, %v886_v17  ;;  %v906_v25 = vadd.f32 %v1876_v46, %v905_v26  ;;  %v1880_v56 = vpop.eup %1879  ;;  %vm923_vm13 = vweird.f32 %v1878_v3 }
 0x2fb   :  { %v895_v27 = vsel %vm894_vm9, %v1874_v48, %v891_v15  ;;  %v926_v48 = vand.u32 2147483647, %v886_v17  ;;  %vm924_vm15 = vmor %vm922_vm14, %vm923_vm13 }
 0x2fc   :  { %v919_v2 = vsub.f32 1.0, %v918_v16  ;;  %v900_v33 = vsel %vm897_vm11, %v899_v57, %v895_v27  ;;  %v910_v60 = vsel %vm909_vm10, %v1876_v46, %v906_v25  ;;  %v2705_v57 = vld [vmem:[#allocation18_spill] sm:$0xff] }
 0x2fd   :  { %v915_v59 = vsel %vm912_vm12, %v914_v1, %v910_v60  ;;  %v934_v8 = vmul.f32 %v1880_v56, %v900_v33  ;;  %vm927_vm0 = vcmp.eq.f32.partialorder %v926_v48, 8.507059e+37  ;;  %v2706_v48 = vld [vmem:[#allocation19_spill] sm:$0xff] }
 0x2fe   :  { %v933_v13 = vmul.f32 %v915_v59, %v2503_v7  ;;  %v920_v28 = vmul.f32 %v1878_v3, %v919_v2 }
 0x300   :  { %v2543_v43 = vadd.f32 %v934_v8, %v933_v13  ;;  %v921_v29 = vadd.f32 %v1878_v3, %v920_v28 }
 0x302   :  { %1881 = vtanh.f32 %v2543_v43  ;;  %v925_v38 = vsel %vm924_vm15, %v1878_v3, %v921_v29 }
 0x303   :  { %v930_v19 = vsel %vm927_vm0, %v929_v14, %v925_v38 }
 0x308   :  { %v1882_v46 = vpop.eup %1881 }
 0x309   :  { %v937_v41 = vmul.f32 %v1882_v46, %v930_v19 }
 0x30b   :  { %v942_v47 = vpack.c.bf16 %v937_v41, %v937_v41 }
 0x30d   :  { %951 = vmatmul.bf16.vlgmr.msrb.gmra.mxu0 %v942_v47  ;;  %964 = vmatmul.bf16.vlgmr.msra.gmra.mxu1 %v942_v47 }
 0x30e   :  { %977 = vmatmul.bf16.vlgmr.msrb.gmra.mxu2 %v942_v47  ;;  %990 = vmatmul.bf16.vlgmr.msrb.gmra.mxu3 %v942_v47 }
 0x30f   :  { %1191 = vmatpush.bf16.msrb.mxu0 %v2120_v23  ;;  %1204 = vmatpush.bf16.msra.mxu1 %v2118_v22 }
 0x310   :  { %1217 = vmatpush.bf16.msrb.mxu2 %v2127_v30  ;;  %1230 = vmatpush.bf16.msrb.mxu3 %v2137_v40 }
 0x313   :  { %1192 = vmatpush.bf16.msrb.mxu0 %v2132_v32  ;;  %1205 = vmatpush.bf16.msra.mxu1 %v2129_v31 }
 0x314   :  { %1218 = vmatpush.bf16.msrb.mxu2 %v2135_v37  ;;  %1231 = vmatpush.bf16.msrb.mxu3 %v2155_v55 }
 0x317   :  { %1193 = vmatpush.bf16.msrb.mxu0 %v2143_v45  ;;  %1206 = vmatpush.bf16.msra.mxu1 %v2140_v44 }
 0x318   :  { %1219 = vmatpush.bf16.msrb.mxu2 %v2147_v49  ;;  %1232 = vmatpush.bf16.msrb.mxu3 %v2164_v63 }
 0x31b   :  { %1194 = vmatpush.bf16.msrb.mxu0 %v2161_v61  ;;  %1207 = vmatpush.bf16.msra.mxu1 %v2158_v58 }
 0x31c   :  { %1220 = vmatpush.bf16.msrb.mxu2 %v2170_v5  ;;  %1233 = vmatpush.bf16.msrb.mxu3 %v2176_v9 }
 0x31f   :  { %1195 = vmatpush.bf16.msrb.mxu0 %v2173_v6  ;;  %1208 = vmatpush.bf16.msra.mxu1 %v2193_v21 }
 0x320   :  { %1221 = vmatpush.bf16.msrb.mxu2 %v2187_v20  ;;  %1234 = vmatpush.bf16.msrb.mxu3 %v2195_v24 }
 0x323   :  { %1196 = vmatpush.bf16.msrb.mxu0 %v2190_v12  ;;  %1209 = vmatpush.bf16.msra.mxu1 %v2198_v34 }
 0x324   :  { %1222 = vmatpush.bf16.msrb.mxu2 %v2201_v35  ;;  %1235 = vmatpush.bf16.msrb.mxu3 %v2207_v39 }
 0x327   :  { %1197 = vmatpush.bf16.msrb.mxu0 %v2204_v36  ;;  %1210 = vmatpush.bf16.msra.mxu1 %v2236_v4 }
 0x328   :  { %1223 = vmatpush.bf16.msrb.mxu2 %v2217_v51  ;;  %1236 = vmatpush.bf16.msrb.mxu3 %v2223_v53 }
 0x32b   :  { %1198 = vmatpush.bf16.msrb.mxu0 %v2220_v52  ;;  %1211 = vmatpush.bf16.msra.mxu1 %v2243_v10 }
 0x32c   :  { %1224 = vmatpush.bf16.msrb.mxu2 %v2226_v62  ;;  %1237 = vmatpush.bf16.msrb.mxu3 %v2230_v0 }
 0x38a   :  { %v952_v7 = vpop.f32.mrf.mxu0  ;;  %v965_v17 = vpop.f32.mrf.mxu1 }
 0x38b   :  { %v995_v54 = vadd.f32 %v952_v7, %v2703_v11  ;;  %v996_v26 = vadd.f32 %v965_v17, %v2704_v18 }
 0x38d   :  { %v1723_v42 = vmul.f32 -1.442695, %v995_v54  ;;  %v1724_v3 = vmul.f32 -1.442695, %v996_v26 }
 0x38f   :  { %1883 = vpow2.f32 %v1723_v42 }
 0x390   :  { %1885 = vpow2.f32 %v1724_v3 }
 0x391   :  { %v978_v15 = vpop.f32.mrf.mxu2  ;;  %v991_v16 = vpop.f32.mrf.mxu3 }
 0x392   :  { %v997_v25 = vadd.f32 %v978_v15, %v2705_v57  ;;  %v954_v1 = vpop.f32.mrf.mxu0  ;;  %v967_v27 = vpop.f32.mrf.mxu1  ;;  %v998_v38 = vadd.f32 %v991_v16, %v2706_v48 }
 0x394   :  { %v1725_v56 = vmul.f32 -1.442695, %v997_v25 }
 0x395   :  { %v1884_v2 = vpop.eup %1883 }
 0x396   :  { %v1886_v33 = vpop.eup %1885  ;;  %v1008_v60 = vadd.f32 1.0, %v1884_v2  ;;  %1887 = vpow2.f32 %v1725_v56 }
 0x397   :  { %v1009_v59 = vadd.f32 1.0, %v1886_v33 }
 0x398   :  { %1889 = vrcp.f32 %v1008_v60  ;;  %v1022_v7 = vand.u32 2147483648, %v1008_v60  ;;  %v1020_v54 = vand.u32 2147483647, %v1008_v60  ;;  %vm1016_vm3 = vweird.f32 %v1008_v60 }
 0x399   :  { %1891 = vrcp.f32 %v1009_v59  ;;  %v980_v8 = vpop.f32.mrf.mxu2  ;;  %v993_v13 = vpop.f32.mrf.mxu3  ;;  %v1037_v17 = vand.u32 2147483648, %v1009_v59  ;;  %v1035_v26 = vand.u32 2147483647, %v1009_v59  ;;  %vm1031_vm4 = vweird.f32 %v1009_v59 }
 0x39a   :  { %v1023_v16 = vor.u32 1.1754944e-38, %v1022_v7  ;;  %vm1021_vm7 = vcmp.eq.f32.partialorder %v1020_v54, 8.507059e+37 }
 0x39b   :  { %v1038_v25 = vor.u32 1.1754944e-38, %v1037_v17  ;;  %vm1036_vm8 = vcmp.eq.f32.partialorder %v1035_v26, 8.507059e+37 }
 0x39c   :  { %v1888_v28 = vpop.eup %1887 }
 0x39d   :  { %v1010_v29 = vadd.f32 1.0, %v1888_v28 }
 0x39e   :  { %v1890_v50 = vpop.eup %1889 }
 0x39f   :  { %v1892_v14 = vpop.eup %1891  ;;  %v1012_v46 = vmul.f32 %v1890_v50, %v1008_v60  ;;  %1893 = vrcp.f32 %v1010_v29  ;;  %vm1017_vm1 = vweird.f32 %v1890_v50  ;;  %vm1046_vm10 = vweird.f32 %v1010_v29 }
 0x3a0   :  { %v1027_v19 = vmul.f32 %v1892_v14, %v1009_v59  ;;  %1895 = vtanh.f32 %v998_v38  ;;  %vm1032_vm2 = vweird.f32 %v1892_v14  ;;  %vm1018_vm5 = vmor %vm1016_vm3, %vm1017_vm1  ;;  %v1052_v38 = vand.u32 2147483648, %v1010_v29 }
 0x3a1   :  { %v1013_v41 = vsub.f32 1.0, %v1012_v46  ;;  %vm1033_vm6 = vmor %vm1031_vm4, %vm1032_vm2 }
 0x3a2   :  { %v1028_v47 = vsub.f32 1.0, %v1027_v19  ;;  %v1053_v19 = vor.u32 1.1754944e-38, %v1052_v38 }
 0x3a3   :  { %v1014_v11 = vmul.f32 %v1890_v50, %v1013_v41 }
 0x3a4   :  { %v1029_v18 = vmul.f32 %v1892_v14, %v1028_v47 }
 0x3a5   :  { %v1894_v42 = vpop.eup %1893  ;;  %v1015_v3 = vadd.f32 %v1890_v50, %v1014_v11 }
 0x3a6   :  { %v1042_v15 = vmul.f32 %v1894_v42, %v1010_v29  ;;  %v1030_v57 = vadd.f32 %v1892_v14, %v1029_v18  ;;  %v1896_v27 = vpop.eup %1895  ;;  %vm1047_vm9 = vweird.f32 %v1894_v42 }
 0x3a7   :  { %v1019_v1 = vsel %vm1018_vm5, %v1890_v50, %v1015_v3  ;;  %v1050_v50 = vand.u32 2147483647, %v1010_v29  ;;  %vm1048_vm11 = vmor %vm1046_vm10, %vm1047_vm9 }
 0x3a8   :  { %v1043_v56 = vsub.f32 1.0, %v1042_v15  ;;  %v1024_v2 = vsel %vm1021_vm7, %v1023_v16, %v1019_v1  ;;  %v1034_v33 = vsel %vm1033_vm6, %v1892_v14, %v1030_v57 }
 0x3a9   :  { %v1039_v8 = vsel %vm1036_vm8, %v1038_v25, %v1034_v33  ;;  %v1058_v13 = vmul.f32 %v1896_v27, %v1024_v2  ;;  %vm1051_vm12 = vcmp.eq.f32.partialorder %v1050_v50, 8.507059e+37 }
 0x3aa   :  { %v1057_v28 = vmul.f32 %v1039_v8, %v2543_v43  ;;  %v1044_v48 = vmul.f32 %v1894_v42, %v1043_v56 }
 0x3ac   :  { %v2583_v60 = vadd.f32 %v1058_v13, %v1057_v28  ;;  %v1045_v59 = vadd.f32 %v1894_v42, %v1044_v48 }
 0x3ae   :  { %1897 = vtanh.f32 %v2583_v60  ;;  %v1049_v46 = vsel %vm1048_vm11, %v1894_v42, %v1045_v59 }
 0x3af   :  { %v1054_v41 = vsel %vm1051_vm12, %v1053_v19, %v1049_v46 }
 0x3b4   :  { %v1898_v14 = vpop.eup %1897 }
 0x3b5   :  { %v1061_v47 = vmul.f32 %v1898_v14, %v1054_v41 }
 0x3b7   :  { %v1066_v7 = vpack.c.bf16 %v1061_v47, %v1061_v47 }
 0x3b9   :  { %1075 = vmatmul.bf16.vlgmr.msra.gmra.mxu0 %v1066_v7  ;;  %1088 = vmatmul.bf16.vlgmr.msrb.gmra.mxu1 %v1066_v7 }
 0x3ba   :  { %1101 = vmatmul.bf16.vlgmr.msra.gmra.mxu2 %v1066_v7  ;;  %1114 = vmatmul.bf16.vlgmr.msra.gmra.mxu3 %v1066_v7 }
 0x3bb   :  { %1315 = vmatpush.bf16.msra.mxu0 %v2120_v23  ;;  %1328 = vmatpush.bf16.msrb.mxu1 %v2118_v22 }
 0x3bc   :  { %1341 = vmatpush.bf16.msra.mxu2 %v2127_v30  ;;  %1354 = vmatpush.bf16.msra.mxu3 %v2137_v40  ;;  %v2707_v30 = vld [vmem:[#allocation20_spill] sm:$0xff] }
 0x3bf   :  { %1316 = vmatpush.bf16.msra.mxu0 %v2132_v32  ;;  %1329 = vmatpush.bf16.msrb.mxu1 %v2129_v31  ;;  %v2708_v32 = vld [vmem:[#allocation26_spill] sm:$0xff] }
 0x3c0   :  { %1342 = vmatpush.bf16.msra.mxu2 %v2135_v37  ;;  %1355 = vmatpush.bf16.msra.mxu3 %v2155_v55  ;;  %v2709_v55 = vld [vmem:[#allocation21_spill] sm:$0xff] }
 0x3c3   :  { %1317 = vmatpush.bf16.msra.mxu0 %v2143_v45  ;;  %1330 = vmatpush.bf16.msrb.mxu1 %v2140_v44 }
 0x3c4   :  { %1343 = vmatpush.bf16.msra.mxu2 %v2147_v49  ;;  %1356 = vmatpush.bf16.msra.mxu3 %v2164_v63 }
 0x3c7   :  { %1318 = vmatpush.bf16.msra.mxu0 %v2161_v61  ;;  %1331 = vmatpush.bf16.msrb.mxu1 %v2158_v58 }
 0x3c8   :  { %1344 = vmatpush.bf16.msra.mxu2 %v2170_v5  ;;  %1357 = vmatpush.bf16.msra.mxu3 %v2176_v9 }
 0x3cb   :  { %1319 = vmatpush.bf16.msra.mxu0 %v2173_v6  ;;  %1332 = vmatpush.bf16.msrb.mxu1 %v2193_v21 }
 0x3cc   :  { %1345 = vmatpush.bf16.msra.mxu2 %v2187_v20  ;;  %1358 = vmatpush.bf16.msra.mxu3 %v2195_v24 }
 0x3cf   :  { %1320 = vmatpush.bf16.msra.mxu0 %v2190_v12  ;;  %1333 = vmatpush.bf16.msrb.mxu1 %v2198_v34 }
 0x3d0   :  { %1346 = vmatpush.bf16.msra.mxu2 %v2201_v35  ;;  %1359 = vmatpush.bf16.msra.mxu3 %v2207_v39  ;;  %v2710_v39 = vld [vmem:[#allocation22_spill] sm:$0xff] }
 0x3d3   :  { %1321 = vmatpush.bf16.msra.mxu0 %v2204_v36  ;;  %1334 = vmatpush.bf16.msrb.mxu1 %v2236_v4 }
 0x3d4   :  { %1347 = vmatpush.bf16.msra.mxu2 %v2217_v51  ;;  %1360 = vmatpush.bf16.msra.mxu3 %v2223_v53 }
 0x3d7   :  { %1322 = vmatpush.bf16.msra.mxu0 %v2220_v52  ;;  %1335 = vmatpush.bf16.msrb.mxu1 %v2243_v10 }
 0x3d8   :  { %1348 = vmatpush.bf16.msra.mxu2 %v2226_v62  ;;  %1361 = vmatpush.bf16.msra.mxu3 %v2230_v0 }
 0x436   :  { %v1076_v22 = vpop.f32.mrf.mxu0  ;;  %v1089_v23 = vpop.f32.mrf.mxu1 }
 0x437   :  { %v1119_v31 = vadd.f32 %v1076_v22, %v2707_v30  ;;  %v1120_v37 = vadd.f32 %v1089_v23, %v2708_v32  ;;  %v2711_v22 = vld [vmem:[#allocation13_spill] sm:$0xff] }
 0x438   :  { %v2712_v30 = vld [vmem:[#allocation29_spill] sm:$0xff] }
 0x439   :  { %v1726_v40 = vmul.f32 -1.442695, %v1119_v31  ;;  %v1727_v44 = vmul.f32 -1.442695, %v1120_v37 }
 0x43b   :  { %1899 = vpow2.f32 %v1726_v40 }
 0x43c   :  { %1901 = vpow2.f32 %v1727_v44 }
 0x43d   :  { %v1102_v45 = vpop.f32.mrf.mxu2  ;;  %v1115_v49 = vpop.f32.mrf.mxu3 }
 0x43e   :  { %v1121_v58 = vadd.f32 %v1102_v45, %v2709_v55  ;;  %v1078_v61 = vpop.f32.mrf.mxu0  ;;  %v1091_v63 = vpop.f32.mrf.mxu1  ;;  %v1122_v51 = vadd.f32 %v1115_v49, %v2710_v39  ;;  %v2713_v45 = vld [vmem:[#allocation24_spill] sm:$0xff] }
 0x440   :  { %v1728_v5 = vmul.f32 -1.442695, %v1121_v58 }
 0x441   :  { %v1900_v6 = vpop.eup %1899 }
 0x442   :  { %v1902_v9 = vpop.eup %1901  ;;  %v1132_v20 = vadd.f32 1.0, %v1900_v6  ;;  %1903 = vpow2.f32 %v1728_v5 }
 0x443   :  { %v1133_v12 = vadd.f32 1.0, %v1902_v9 }
 0x444   :  { %1905 = vrcp.f32 %v1132_v20  ;;  %v1146_v10 = vand.u32 2147483648, %v1132_v20  ;;  %v1144_v17 = vand.u32 2147483647, %v1132_v20  ;;  %vm1140_vm15 = vweird.f32 %v1132_v20 }
 0x445   :  { %1907 = vrcp.f32 %v1133_v12  ;;  %v1104_v21 = vpop.f32.mrf.mxu2  ;;  %v1117_v24 = vpop.f32.mrf.mxu3  ;;  %v1161_v43 = vand.u32 2147483648, %v1133_v12  ;;  %v1159_v54 = vand.u32 2147483647, %v1133_v12  ;;  %vm1155_vm0 = vweird.f32 %v1133_v12 }
 0x446   :  { %v1147_v3 = vor.u32 1.1754944e-38, %v1146_v10  ;;  %vm1145_vm3 = vcmp.eq.f32.partialorder %v1144_v17, 8.507059e+37 }
 0x447   :  { %v1162_v16 = vor.u32 1.1754944e-38, %v1161_v43  ;;  %vm1160_vm4 = vcmp.eq.f32.partialorder %v1159_v54, 8.507059e+37 }
 0x448   :  { %v1904_v34 = vpop.eup %1903 }
 0x449   :  { %v1134_v35 = vadd.f32 1.0, %v1904_v34 }
 0x44a   :  { %v1906_v36 = vpop.eup %1905 }
 0x44b   :  { %v1908_v52 = vpop.eup %1907  ;;  %v1136_v53 = vmul.f32 %v1906_v36, %v1132_v20  ;;  %1909 = vrcp.f32 %v1134_v35  ;;  %vm1141_vm13 = vweird.f32 %v1906_v36  ;;  %v1176_v59 = vand.u32 2147483648, %v1134_v35 }
 0x44c   :  { %v1151_v62 = vmul.f32 %v1908_v52, %v1133_v12  ;;  %1911 = vtanh.f32 %v1122_v51  ;;  %vm1156_vm14 = vweird.f32 %v1908_v52  ;;  %vm1142_vm1 = vmor %vm1140_vm15, %vm1141_vm13  ;;  %vm1170_vm6 = vweird.f32 %v1134_v35 }
 0x44d   :  { %v1137_v0 = vsub.f32 1.0, %v1136_v53  ;;  %vm1157_vm2 = vmor %vm1155_vm0, %vm1156_vm14  ;;  %v1174_v38 = vand.u32 2147483647, %v1134_v35  ;;  %v1177_v46 = vor.u32 1.1754944e-38, %v1176_v59 }
 0x44e   :  { %v1152_v4 = vsub.f32 1.0, %v1151_v62 }
 0x44f   :  { %v1138_v29 = vmul.f32 %v1906_v36, %v1137_v0  ;;  %vm1175_vm8 = vcmp.eq.f32.partialorder %v1174_v38, 8.507059e+37 }
 0x450   :  { %v1153_v11 = vmul.f32 %v1908_v52, %v1152_v4 }
 0x451   :  { %v1910_v18 = vpop.eup %1909  ;;  %v1139_v26 = vadd.f32 %v1906_v36, %v1138_v29 }
 0x452   :  { %v1166_v42 = vmul.f32 %v1910_v18, %v1134_v35  ;;  %v1154_v15 = vadd.f32 %v1908_v52, %v1153_v11  ;;  %v1912_v25 = vpop.eup %1911  ;;  %vm1171_vm5 = vweird.f32 %v1910_v18  ;;  %v2714_v35 = vld [vmem:[#allocation25_spill] sm:$0xff] }
 0x453   :  { %v1143_v57 = vsel %vm1142_vm1, %v1906_v36, %v1139_v26  ;;  %vm1172_vm7 = vmor %vm1170_vm6, %vm1171_vm5 }
 0x454   :  { %v1167_v1 = vsub.f32 1.0, %v1166_v42  ;;  %v1148_v27 = vsel %vm1145_vm3, %v1147_v3, %v1143_v57  ;;  %v1158_v56 = vsel %vm1157_vm2, %v1908_v52, %v1154_v15 }
 0x455   :  { %v1163_v2 = vsel %vm1160_vm4, %v1162_v16, %v1158_v56  ;;  %v1182_v33 = vmul.f32 %v1912_v25, %v1148_v27 }
 0x456   :  { %v1181_v8 = vmul.f32 %v1163_v2, %v2583_v60  ;;  %v1168_v13 = vmul.f32 %v1910_v18, %v1167_v1 }
 0x458   :  { %v2623_v28 = vadd.f32 %v1182_v33, %v1181_v8  ;;  %v1169_v48 = vadd.f32 %v1910_v18, %v1168_v13 }
 0x45a   :  { %1913 = vtanh.f32 %v2623_v28  ;;  %v1173_v50 = vsel %vm1172_vm7, %v1910_v18, %v1169_v48 }
 0x45b   :  { %v1178_v14 = vsel %vm1175_vm8, %v1177_v46, %v1173_v50 }
 0x460   :  { %v1914_v19 = vpop.eup %1913 }
 0x461   :  { %v1185_v41 = vmul.f32 %v1914_v19, %v1178_v14 }
 0x463   :  { %v1190_v47 = vpack.c.bf16 %v1185_v41, %v1185_v41 }
 0x465   :  { %1199 = vmatmul.bf16.vlgmr.msrb.gmra.mxu0 %v1190_v47  ;;  %1212 = vmatmul.bf16.vlgmr.msra.gmra.mxu1 %v1190_v47 }
 0x466   :  { %1225 = vmatmul.bf16.vlgmr.msrb.gmra.mxu2 %v1190_v47  ;;  %1238 = vmatmul.bf16.vlgmr.msrb.gmra.mxu3 %v1190_v47  ;;  %v1809_v47 = vld [vmem:[%s2677_s4 + $0x30] sm:$0xff] }
 0x4e2   :  { %v1200_v60 = vpop.f32.mrf.mxu0  ;;  %v1213_v7 = vpop.f32.mrf.mxu1 }
 0x4e3   :  { %v1243_v23 = vadd.f32 %v1200_v60, %v2711_v22  ;;  %v1244_v31 = vadd.f32 %v1213_v7, %v2712_v30  ;;  %v1808_v60 = vld [vmem:[%s2677_s4 + $0x28] sm:$0xff]  ;;  %v1807_v7 = vld [vmem:[%s2677_s4 + $0x20] sm:$0xff]  ;;  %v1806_v22 = vld [vmem:[%s2677_s4 + $0x18] sm:$0xff] }
 0x4e4   :  { %v2716_v30 = vld [vmem:[#allocation14_spill] sm:$0xff] }
 0x4e5   :  { %v1729_v32 = vmul.f32 -1.442695, %v1243_v23  ;;  %v1730_v37 = vmul.f32 -1.442695, %v1244_v31  ;;  %v2715_v23 = vld [vmem:[#allocation12_spill] sm:$0xff] }
 0x4e6   :  { %v130_v31 = vadd.f32 %v2716_v30, %v2715_v23 }
 0x4e7   :  { %1915 = vpow2.f32 %v1729_v32 }
 0x4e8   :  { %1917 = vpow2.f32 %v1730_v37 }
 0x4e9   :  { %v1226_v40 = vpop.f32.mrf.mxu2  ;;  %v1239_v44 = vpop.f32.mrf.mxu3 }
 0x4ea   :  { %v1245_v49 = vadd.f32 %v1226_v40, %v2713_v45  ;;  %v1202_v55 = vpop.f32.mrf.mxu0  ;;  %v1215_v58 = vpop.f32.mrf.mxu1  ;;  %v1246_v36 = vadd.f32 %v1239_v44, %v2714_v35  ;;  %v2717_v44 = vld [vmem:[#allocation30_spill] sm:$0xff] }
 0x4ec   :  { %v1731_v61 = vmul.f32 -1.442695, %v1245_v49  ;;  %v1805_v49 = vld [vmem:[%s2677_s4 + $0x10] sm:$0xff] }
 0x4ed   :  { %v1916_v63 = vpop.eup %1915 }
 0x4ee   :  { %v1918_v5 = vpop.eup %1917  ;;  %v1256_v6 = vadd.f32 1.0, %v1916_v63  ;;  %1919 = vpow2.f32 %v1731_v61  ;;  %v1804_v61 = vld [vmem:[%s2677_s4 + $0x8] sm:$0xff] }
 0x4ef   :  { %v1257_v9 = vadd.f32 1.0, %v1918_v5 }
 0x4f0   :  { %1921 = vrcp.f32 %v1256_v6  ;;  %v1270_v0 = vand.u32 2147483648, %v1256_v6  ;;  %v1268_v43 = vand.u32 2147483647, %v1256_v6  ;;  %vm1264_vm11 = vweird.f32 %v1256_v6 }
 0x4f1   :  { %1923 = vrcp.f32 %v1257_v9  ;;  %v1228_v20 = vpop.f32.mrf.mxu2  ;;  %v1241_v12 = vpop.f32.mrf.mxu3  ;;  %v1285_v4 = vand.u32 2147483648, %v1257_v9  ;;  %v1283_v17 = vand.u32 2147483647, %v1257_v9  ;;  %vm1279_vm12 = vweird.f32 %v1257_v9 }
 0x4f2   :  { %v1271_v26 = vor.u32 1.1754944e-38, %v1270_v0  ;;  %vm1269_vm15 = vcmp.eq.f32.partialorder %v1268_v43, 8.507059e+37 }
 0x4f3   :  { %v1286_v3 = vor.u32 1.1754944e-38, %v1285_v4  ;;  %vm1284_vm0 = vcmp.eq.f32.partialorder %v1283_v17, 8.507059e+37  ;;  %v2719_v4 = vld [vmem:[#allocation28_spill] sm:$0xff] }
 0x4f4   :  { %v1920_v21 = vpop.eup %1919 }
 0x4f5   :  { %v1258_v24 = vadd.f32 1.0, %v1920_v21  ;;  %v1803_v21 = vld [vmem:[%s2677_s4] sm:$0xff] }
 0x4f6   :  { %v1922_v34 = vpop.eup %1921 }
 0x4f7   :  { %v1924_v39 = vpop.eup %1923  ;;  %v1260_v51 = vmul.f32 %v1922_v34, %v1256_v6  ;;  %1925 = vrcp.f32 %v1258_v24  ;;  %vm1265_vm9 = vweird.f32 %v1922_v34  ;;  %v1300_v48 = vand.u32 2147483648, %v1258_v24  ;;  %v2718_v6 = vld [vmem:[#allocation27_spill] sm:$0xff] }
 0x4f8   :  { %v1275_v52 = vmul.f32 %v1924_v39, %v1257_v9  ;;  %1927 = vtanh.f32 %v1246_v36  ;;  %vm1280_vm10 = vweird.f32 %v1924_v39  ;;  %vm1266_vm13 = vmor %vm1264_vm11, %vm1265_vm9  ;;  %vm1294_vm2 = vweird.f32 %v1258_v24 }
 0x4f9   :  { %v1261_v53 = vsub.f32 1.0, %v1260_v51  ;;  %vm1281_vm14 = vmor %vm1279_vm12, %vm1280_vm10  ;;  %v1298_v59 = vand.u32 2147483647, %v1258_v24  ;;  %v1301_v50 = vor.u32 1.1754944e-38, %v1300_v48 }
 0x4fa   :  { %v1276_v62 = vsub.f32 1.0, %v1275_v52 }
 0x4fb   :  { %v1262_v10 = vmul.f32 %v1922_v34, %v1261_v53  ;;  %vm1299_vm4 = vcmp.eq.f32.partialorder %v1298_v59, 8.507059e+37 }
 0x4fc   :  { %v1277_v29 = vmul.f32 %v1924_v39, %v1276_v62 }
 0x4fd   :  { %v1926_v11 = vpop.eup %1925  ;;  %v1263_v54 = vadd.f32 %v1922_v34, %v1262_v10 }
 0x4fe   :  { %v1290_v18 = vmul.f32 %v1926_v11, %v1258_v24  ;;  %v1278_v42 = vadd.f32 %v1924_v39, %v1277_v29  ;;  %v1928_v16 = vpop.eup %1927  ;;  %vm1295_vm1 = vweird.f32 %v1926_v11 }
 0x4ff   :  { %v1267_v15 = vsel %vm1266_vm13, %v1922_v34, %v1263_v54  ;;  %vm1296_vm3 = vmor %vm1294_vm2, %vm1295_vm1 }
 0x500   :  { %v1291_v57 = vsub.f32 1.0, %v1290_v18  ;;  %v1272_v25 = vsel %vm1269_vm15, %v1271_v26, %v1267_v15  ;;  %v1282_v1 = vsel %vm1281_vm14, %v1924_v39, %v1278_v42 }
 0x501   :  { %v1287_v27 = vsel %vm1284_vm0, %v1286_v3, %v1282_v1  ;;  %v1306_v56 = vmul.f32 %v1928_v16, %v1272_v25 }
 0x502   :  { %v1305_v2 = vmul.f32 %v1287_v27, %v2623_v28  ;;  %v1292_v33 = vmul.f32 %v1926_v11, %v1291_v57  ;;  %v1810_v28 = vld [vmem:[%s2677_s4 + $0x38] sm:$0xff]  ;;  %s2029_s4 = smov [#allocation7]  }
 0x503   :  { %1504 = vmatpush.bf16.msrb.mxu0 %v1810_v28  ;;  %s1534_s30 = sshll.u32 %s2029_s4, 4  ;;  %s1535_s30 = int_to_ptr.vmem [resolvable:$true] %s1534_s30 }
 0x504   :  { %v2631_v8 = vadd.f32 %v1306_v56, %v1305_v2  ;;  %v1293_v13 = vadd.f32 %v1926_v11, %v1292_v33 }
 0x506   :  { %1929 = vtanh.f32 %v2631_v8  ;;  %v1297_v38 = vsel %vm1296_vm3, %v1926_v11, %v1293_v13 }
 0x507   :  { %v1302_v19 = vsel %vm1299_vm4, %v1301_v50, %v1297_v38  ;;  %1505 = vmatpush.bf16.msrb.mxu0 %v1809_v47 }
 0x50b   :  { %1506 = vmatpush.bf16.msrb.mxu0 %v1808_v60 }
 0x50c   :  { %v1930_v46 = vpop.eup %1929 }
 0x50d   :  { %v1309_v14 = vmul.f32 %v1930_v46, %v1302_v19 }
 0x50f   :  { %v1314_v41 = vpack.c.bf16 %v1309_v14, %v1309_v14  ;;  %1507 = vmatpush.bf16.msrb.mxu0 %v1807_v7 }
 0x511   :  { %1323 = vmatmul.bf16.vlgmr.msra.gmra.mxu0 %v1314_v41  ;;  %1336 = vmatmul.bf16.vlgmr.msrb.gmra.mxu1 %v1314_v41 }
 0x512   :  { %1349 = vmatmul.bf16.vlgmr.msra.gmra.mxu2 %v1314_v41  ;;  %1362 = vmatmul.bf16.vlgmr.msra.gmra.mxu3 %v1314_v41 }
 0x513   :  { %1508 = vmatpush.bf16.msrb.mxu0 %v1806_v22 }
 0x517   :  { %1509 = vmatpush.bf16.msrb.mxu0 %v1805_v49 }
 0x51b   :  { %1510 = vmatpush.bf16.msrb.mxu0 %v1804_v61 }
 0x51f   :  { %1511 = vmatpush.bf16.msrb.mxu0 %v1803_v21 }
 0x58e   :  { %v1324_v32 = vpop.f32.mrf.mxu0  ;;  %v1337_v37 = vpop.f32.mrf.mxu1 }
 0x58f   :  { %v1367_v40 = vadd.f32 %v1324_v32, %v130_v31  ;;  %v1368_v45 = vadd.f32 %v1337_v37, %v2717_v44 }
 0x591   :  { %v1732_v55 = vmul.f32 -1.442695, %v1367_v40  ;;  %v1733_v58 = vmul.f32 -1.442695, %v1368_v45 }
 0x593   :  { %1931 = vpow2.f32 %v1732_v55 }
 0x594   :  { %1933 = vpow2.f32 %v1733_v58 }
 0x595   :  { %v1350_v63 = vpop.f32.mrf.mxu2  ;;  %v1363_v5 = vpop.f32.mrf.mxu3 }
 0x596   :  { %v1369_v9 = vadd.f32 %v1350_v63, %v2718_v6  ;;  %v1326_v20 = vpop.f32.mrf.mxu0  ;;  %v1339_v12 = vpop.f32.mrf.mxu1  ;;  %v1370_v10 = vadd.f32 %v1363_v5, %v2719_v4 }
 0x598   :  { %v1734_v24 = vmul.f32 -1.442695, %v1369_v9 }
 0x599   :  { %v1932_v34 = vpop.eup %1931 }
 0x59a   :  { %v1934_v35 = vpop.eup %1933  ;;  %v1380_v36 = vadd.f32 1.0, %v1932_v34  ;;  %1935 = vpow2.f32 %v1734_v24 }
 0x59b   :  { %v1381_v39 = vadd.f32 1.0, %v1934_v35 }
 0x59c   :  { %1937 = vrcp.f32 %v1380_v36  ;;  %v1394_v18 = vand.u32 2147483648, %v1380_v36  ;;  %v1392_v3 = vand.u32 2147483647, %v1380_v36  ;;  %vm1388_vm7 = vweird.f32 %v1380_v36 }
 0x59d   :  { %1939 = vrcp.f32 %v1381_v39  ;;  %v1352_v51 = vpop.f32.mrf.mxu2  ;;  %v1365_v52 = vpop.f32.mrf.mxu3  ;;  %v1409_v26 = vand.u32 2147483648, %v1381_v39  ;;  %v1407_v16 = vand.u32 2147483647, %v1381_v39  ;;  %vm1403_vm8 = vweird.f32 %v1381_v39 }
 0x59e   :  { %v1395_v27 = vor.u32 1.1754944e-38, %v1394_v18  ;;  %vm1393_vm11 = vcmp.eq.f32.partialorder %v1392_v3, 8.507059e+37 }
 0x59f   :  { %v1410_v2 = vor.u32 1.1754944e-38, %v1409_v26  ;;  %vm1408_vm12 = vcmp.eq.f32.partialorder %v1407_v16, 8.507059e+37 }
 0x5a0   :  { %v1936_v53 = vpop.eup %1935 }
 0x5a1   :  { %v1382_v62 = vadd.f32 1.0, %v1936_v53 }
 0x5a2   :  { %v1938_v0 = vpop.eup %1937 }
 0x5a3   :  { %v1940_v43 = vpop.eup %1939  ;;  %v1384_v29 = vmul.f32 %v1938_v0, %v1380_v36  ;;  %1941 = vrcp.f32 %v1382_v62  ;;  %vm1389_vm5 = vweird.f32 %v1938_v0  ;;  %v1424_v47 = vand.u32 2147483648, %v1382_v62 }
 0x5a4   :  { %v1399_v17 = vmul.f32 %v1940_v43, %v1381_v39  ;;  %1943 = vtanh.f32 %v1370_v10  ;;  %vm1404_vm6 = vweird.f32 %v1940_v43  ;;  %vm1390_vm9 = vmor %vm1388_vm7, %vm1389_vm5  ;;  %vm1418_vm14 = vweird.f32 %v1382_v62 }
 0x5a5   :  { %v1385_v11 = vsub.f32 1.0, %v1384_v29  ;;  %vm1405_vm10 = vmor %vm1403_vm8, %vm1404_vm6  ;;  %v1422_v60 = vand.u32 2147483647, %v1382_v62  ;;  %v1425_v22 = vor.u32 1.1754944e-38, %v1424_v47 }
 0x5a6   :  { %v1400_v54 = vsub.f32 1.0, %v1399_v17 }
 0x5a7   :  { %v1386_v42 = vmul.f32 %v1938_v0, %v1385_v11  ;;  %vm1423_vm0 = vcmp.eq.f32.partialorder %v1422_v60, 8.507059e+37 }
 0x5a8   :  { %v1401_v15 = vmul.f32 %v1940_v43, %v1400_v54 }
 0x5a9   :  { %v1942_v57 = vpop.eup %1941  ;;  %v1387_v25 = vadd.f32 %v1938_v0, %v1386_v42 }
 0x5aa   :  { %v1414_v1 = vmul.f32 %v1942_v57, %v1382_v62  ;;  %v1402_v56 = vadd.f32 %v1940_v43, %v1401_v15  ;;  %v1944_v13 = vpop.eup %1943  ;;  %vm1419_vm13 = vweird.f32 %v1942_v57 }
 0x5ab   :  { %v1391_v33 = vsel %vm1390_vm9, %v1938_v0, %v1387_v25  ;;  %vm1420_vm15 = vmor %vm1418_vm14, %vm1419_vm13 }
 0x5ac   :  { %v1415_v48 = vsub.f32 1.0, %v1414_v1  ;;  %v1396_v59 = vsel %vm1393_vm11, %v1395_v27, %v1391_v33  ;;  %v1406_v38 = vsel %vm1405_vm10, %v1940_v43, %v1402_v56 }
 0x5ad   :  { %v1411_v50 = vsel %vm1408_vm12, %v1410_v2, %v1406_v38  ;;  %v1430_v46 = vmul.f32 %v1944_v13, %v1396_v59 }
 0x5ae   :  { %v1416_v19 = vmul.f32 %v1942_v57, %v1415_v48  ;;  %v1429_v14 = vmul.f32 %v1411_v50, %v2631_v8  ;;  %v1818_v8 = vld [vmem:[%s2678_s5] ss:$0 sm:$0xff] }
 0x5b0   :  { %v1431_v41 = vadd.f32 %v1430_v46, %v1429_v14  ;;  %v1417_v28 = vadd.f32 %v1942_v57, %v1416_v19 }
 0x5b2   :  { %1945 = vtanh.f32 %v1431_v41  ;;  %v1421_v7 = vsel %vm1420_vm15, %v1942_v57, %v1417_v28 }
 0x5b3   :  { %v1426_v30 = vsel %vm1423_vm0, %v1425_v22, %v1421_v7 }
 0x5b8   :  { %v1946_v23 = vpop.eup %1945 }
 0x5b9   :  { %v1433_v31 = vmul.f32 %v1946_v23, %v1426_v30 }
 0x5bb   :  { %v1435_v32 = vpack.c.bf16 %v1433_v31, %v1433_v31  ;;  %1434 = vst [vmem:[#allocation7] sm:$0xff] %v1433_v31 }
 0x5bc   :  { %1539 = dma.vmem_to_hbm [thread:$0]  %s1535_s30, 128, %s1537_s9, [#allocation8]  }
 0x5bd   :  { %1512 = vmatmul.bf16.vlgmr.msrb.gmra.mxu0 %v1435_v32 }
 0x63a   :  { %v1513_v37 = vpop.f32.mrf.mxu0 }
 0x63b   :  { %v1514_v40 = vadd.f32 %v1818_v8, %v1513_v37 }
 0x63d   :  { %1517 = vst [vmem:[#allocation6] sm:$0xff] %v1514_v40 }
 0x63e   :  { %1528 = dma.vmem_to_hbm [thread:$0]  %s1524_s13, 128, %s1526_s14, [#allocation5]  }
 0x642   :  { %v1515_v44 = vpop.f32.mrf.mxu0 }
 0x643   :  { %2021 = dma.done.wait [#allocation5], 128  }
 0x644   :  { %2022 = vsyncadd [#allocation5], 4294967168 }
 0x645   :  { %2023 = dma.done.wait [#allocation8], 128  }
 0x646   :  { %2024 = vsyncadd [#allocation8], 4294967168 }
 0x647   :  { %1548 = vsyncpa [#allocation4], 1 }
 0x648   :  { %1549 = vsyncpa [#allocation5], 1 }
 0x649   :  { %1550 = vsyncpa [#allocation8], 1 }

</bundles_post_ra>
